<compile_context>
chip_gen: v6e
topology: v6e:2x2x1
jax: 0.10.0
libtpu: 0.0.40
codegen_flags: <defaults>
</compile_context>

<pallas_src>
import numpy as np
import jax
import jax.numpy as jnp
from jax import lax
from jax.experimental import pallas as pl
from jax.experimental.pallas import tpu as pltpu


def _make_kernel(bb, T, D, H, O, L, bi):
    """Fused (bi)LSTM + masked attention softmax + pooling + linear."""
    HB = bi * H          # hidden width across directions
    G = 4 * HB           # packed gate width: [i | f | g | o], each HB wide

    def kernel(*refs):
        it = iter(refs)
        length_ref = next(it)                                  # (bb, 1) int32
        x_ref = next(it)                                       # (T*bb, D), rows (t, b)
        layer_refs = [(next(it), next(it), next(it)) for _ in range(L)]
        watt_ref = next(it)                                    # (1, HB) f32
        w2_ref = next(it)                                      # (HB, O) f32
        b2_ref = next(it)                                      # (1, O) f32
        out_ref = next(it)                                     # (bb, O)
        outfinal_ref = next(it)                                # (bb, HB)
        weight_ref = next(it)                                  # (bb, T)
        gx_ref = next(it)                                      # (T, bb, G) f32 scratch
        h_refs = [next(it) for _ in range(bi)]                 # (T, bb, HB) f32 scratches

        length = length_ref[...]                               # (bb, 1) int32 (hoisted)

        # hoisted lane-index constants
        lane_hb = lax.broadcasted_iota(jnp.int32, (bb, HB), 1)
        dir0_hb = lane_hb < H                                  # forward-direction lanes
        if bi == 2:
            lane_g = lax.broadcasted_iota(jnp.int32, (bb, G), 1)
            dir0_g = (lane_g % HB) < H

        for li in range(L):
            wx_ref, bx_ref, whh_ref = layer_refs[li]

            # ---- input projection hoisted out of the recurrence ------------
            # one big bf16 MXU matmul per layer, f32 accumulation.
            if li == 0:
                lhs = x_ref[...].astype(jnp.bfloat16)          # (T*bb, D)
            else:
                if bi == 2:
                    prev = jnp.where(dir0_hb, h_refs[0][...], h_refs[1][...])
                else:
                    prev = h_refs[0][...]
                lhs = prev.reshape(T * bb, HB).astype(jnp.bfloat16)
            proj = (jnp.dot(lhs, wx_ref[...],
                            preferred_element_type=jnp.float32)
                    + bx_ref[...])                             # (T*bb, G) f32
            gx_ref[...] = proj.reshape(T, bb, G)
            # TODO(synk): for very long T, chunk this projection over T (or
            # store gx / the h history in bf16) to bound VMEM on v7x (64 MiB).

            whh = whh_ref[...]                                 # (HB, G) bf16 block-diag
            # TODO(synk): when bi*H exceeds the MXU K tile (>128), split whh
            # into two per-direction (bb,H)x(H,4H) matmuls to skip zero blocks.

            # ---- fused bidirectional recurrence ----------------------------
            def step(k, carry):
                h_cat, c_cat = carry                           # (bb, HB) f32 each
                t_f = k
                t_r = T - 1 - k
                g_rec = jnp.dot(h_cat.astype(jnp.bfloat16), whh,
                                preferred_element_type=jnp.float32)      # (bb, G)
                if bi == 2:
                    gxf = gx_ref[t_f]                          # (bb, G) full-sublane slab
                    gxr = gx_ref[t_r]
                    gx_t = jnp.where(dir0_g, gxf, gxr)
                    tvec = jnp.where(dir0_hb, t_f, t_r)        # (bb, HB) int32
                else:
                    gx_t = gx_ref[t_f]
                    tvec = t_f
                gates = g_rec + gx_t
                i_g = jax.nn.sigmoid(gates[:, 0:HB])
                f_g = jax.nn.sigmoid(gates[:, HB:2 * HB])
                g_g = jnp.tanh(gates[:, 2 * HB:3 * HB])
                o_g = jax.nn.sigmoid(gates[:, 3 * HB:4 * HB])
                c_new = f_g * c_cat + i_g * g_g
                h_new = o_g * jnp.tanh(c_new)
                m = length > tvec                              # pack_padded mask
                c2 = jnp.where(m, c_new, c_cat)
                h2 = jnp.where(m, h_new, h_cat)
                h_refs[0][t_f] = h2                            # leading-dim store
                if bi == 2:
                    h_refs[1][t_r] = h2
                return (h2, c2)

            carry = (jnp.zeros((bb, HB), jnp.float32),
                     jnp.zeros((bb, HB), jnp.float32))
            # TODO(synk): bound the trip count by max(length) (scalar prefetch)
            # to skip fully-padded timesteps for ragged batches (requires
            # zero-initialising the unwritten tail of the h history).
            carry = lax.fori_loop(0, T, step, carry, unroll=min(T, 8))

        # ---- attention: scores (single reduce / t) + masked softmax ---------
        watt = watt_ref[...]                                   # (1, HB)
        pot_cols = []
        for t in range(T):                                     # post-loop, static T
            if bi == 2:
                hc = jnp.where(dir0_hb, h_refs[0][t], h_refs[1][t])
                h_refs[0][t] = hc                              # keep combined history
            else:
                hc = h_refs[0][t]
            pot_cols.append(jnp.sum(hc * watt, axis=-1, keepdims=True))  # (bb, 1)
        pot = jnp.concatenate(pot_cols, axis=-1)               # (bb, T)

        t_idx = lax.broadcasted_iota(jnp.int32, (bb, T), 1)
        valid = t_idx < length                                 # (bb, T)
        masked = jnp.where(valid, pot, jnp.float32(-1e30))
        mmax = jnp.max(masked, axis=-1, keepdims=True)
        e = jnp.where(valid, jnp.exp(pot - mmax), jnp.float32(0.0))
        denom = jnp.sum(e, axis=-1, keepdims=True)
        denom = jnp.where(denom > 0.0, denom, jnp.float32(1.0))  # length==0 guard
        w = e / denom                                          # exact (no approx recip)
        weight_ref[...] = w

        # ---- attention pooling + final linear --------------------------------
        pool = jnp.zeros((bb, HB), jnp.float32)
        for t in range(T):
            pool = pool + w[:, t:t + 1] * h_refs[0][t]         # combined history
        outfinal_ref[...] = pool
        out_ref[...] = (jnp.dot(pool, w2_ref[...],
                                preferred_element_type=jnp.float32)
                        + b2_ref[...])

    return kernel


# ----------------------- host-side weight packing ---------------------------
def _pack_net_params(lstm_params, w_att, w2, b2, D, H, L, bi):
    """Pack PyTorch-layout LSTM weights into gate-major, direction-stacked
    matrices: columns ordered [i | f | g | o], each block bi*H wide with the
    per-direction H-wide sub-blocks [dir0 | dir1]. Matmul weights are bf16."""
    HB = bi * H
    G = 4 * HB
    layers = []
    for li in range(L):
        din = D if li == 0 else H
        if li == 0:
            wx_big = np.zeros((din, 4, bi, H), np.float32)
            for d in range(bi):
                wih = np.asarray(lstm_params[d][li][0], np.float32)     # (4H, din)
                wx_big[:, :, d, :] = wih.T.reshape(din, 4, H)
            wx = wx_big.reshape(din, G)
        else:
            wx_big = np.zeros((bi, H, 4, bi, H), np.float32)
            for d in range(bi):
                wih = np.asarray(lstm_params[d][li][0], np.float32)     # (4H, H)
                wx_big[d, :, :, d, :] = wih.T.reshape(H, 4, H)
            wx = wx_big.reshape(HB, G)
        whh_big = np.zeros((bi, H, 4, bi, H), np.float32)
        b_big = np.zeros((4, bi, H), np.float32)
        for d in range(bi):
            whh = np.asarray(lstm_params[d][li][1], np.float32)         # (4H, H)
            whh_big[d, :, :, d, :] = whh.T.reshape(H, 4, H)
            bsum = (np.asarray(lstm_params[d][li][2], np.float32)
                    + np.asarray(lstm_params[d][li][3], np.float32))    # (4H,)
            b_big[:, d, :] = bsum.reshape(4, H)
        layers.append((jnp.asarray(wx).astype(jnp.bfloat16),
                       jnp.asarray(b_big.reshape(1, G), jnp.float32),
                       jnp.asarray(whh_big.reshape(HB, G)).astype(jnp.bfloat16)))
    watt = jnp.asarray(np.asarray(w_att, np.float32).reshape(1, HB))
    w2t = jnp.asarray(np.asarray(w2, np.float32).T)                     # (HB, O)
    b2r = jnp.asarray(np.asarray(b2, np.float32).reshape(1, -1))        # (1, O)
    return layers, watt, w2t, b2r


def _has_two_tensorcores():
    """Heuristic: only v7x-class chips expose 2 TensorCores worth splitting."""
    try:
        kind = jax.devices()[0].device_kind.lower()
    except Exception:
        return False
    return "7" in kind


# ----------------------- wrapper ---------------------------------------------
def net_forward(x, length, lstm_params, w_att, w2, b2,
                hidden_dim, output_dim, num_layers, bi_num):
    B, T, D = x.shape
    H, O, L, bi = hidden_dim, output_dim, num_layers, bi_num
    HB = bi * H
    G = 4 * HB

    # ---- pad batch to a multiple of 8 (f32 sublane): unmasked per-step I/O ---
    B_pad = ((B + 7) // 8) * 8
    length_i = jnp.asarray(length, jnp.int32).reshape(B)
    x_f = x.astype(jnp.float32)
    if B_pad != B:
        x_f = jnp.concatenate(
            [x_f, jnp.zeros((B_pad - B, T, D), jnp.float32)], axis=0)
        length_i = jnp.concatenate(
            [length_i, jnp.zeros((B_pad - B,), jnp.int32)], axis=0)

    # ---- batch grid split only on multi-TC chips and only if bb stays >= 8 ---
    if _has_two_tensorcores() and B_pad % 16 == 0 and (B_pad // 2) >= 8:
        nb = 2
    else:
        nb = 1
    bb = B_pad // nb
    # TODO(synk): for tiny batches on v7x, splitting the two LSTM directions
    # (instead of the batch) across the two TensorCores would halve the serial
    # recurrence wall-clock.

    # host-side layout plumbing (cheap XLA ops outside the kernel):
    # x block i holds rows r = t*bb + j  <->  (time t, batch i*bb + j)
    x_k = (x_f.reshape(nb, bb, T, D)
              .transpose(0, 2, 1, 3)
              .reshape(nb, T * bb, D))
    len_k = length_i.reshape(nb, bb, 1)

    layers, watt, w2t, b2r = _pack_net_params(lstm_params, w_att, w2, b2, D, H, L, bi)

    inputs = [len_k, x_k]
    in_specs = [
        pl.BlockSpec((None, bb, 1), lambda i: (i, 0, 0)),
        pl.BlockSpec((None, T * bb, D), lambda i: (i, 0, 0)),
    ]
    for li in range(L):
        wx, bx, whh = layers[li]
        inputs += [wx, bx, whh]
        in_specs += [
            pl.BlockSpec(wx.shape, lambda i: (0, 0)),
            pl.BlockSpec((1, G), lambda i: (0, 0)),
            pl.BlockSpec((HB, G), lambda i: (0, 0)),
        ]
    inputs += [watt, w2t, b2r]
    in_specs += [
        pl.BlockSpec((1, HB), lambda i: (0, 0)),
        pl.BlockSpec((HB, O), lambda i: (0, 0)),
        pl.BlockSpec((1, O), lambda i: (0, 0)),
    ]

    out_shape = (
        jax.ShapeDtypeStruct((nb, bb, O), jnp.float32),
        jax.ShapeDtypeStruct((nb, bb, HB), jnp.float32),
        jax.ShapeDtypeStruct((nb, bb, T), jnp.float32),
    )
    out_specs = (
        pl.BlockSpec((None, bb, O), lambda i: (i, 0, 0)),
        pl.BlockSpec((None, bb, HB), lambda i: (i, 0, 0)),
        pl.BlockSpec((None, bb, T), lambda i: (i, 0, 0)),
    )
    scratch = ([pltpu.VMEM((T, bb, G), jnp.float32)]
               + [pltpu.VMEM((T, bb, HB), jnp.float32) for _ in range(bi)])

    # ---- explicit VMEM budget: raise scoped limit only when needed ----------
    weight_bytes = sum(int(np.prod(a.shape)) * a.dtype.itemsize
                       for trio in layers for a in trio)
    weight_bytes += (int(watt.size) + int(w2t.size) + int(b2r.size)) * 4
    scratch_bytes = T * bb * G * 4 + bi * T * bb * HB * 4
    io_bytes = 2 * (T * bb * D * 4 + bb * (1 + O + HB + T) * 4)
    est_bytes = scratch_bytes + io_bytes + 2 * weight_bytes + (2 << 20)
    cp_kwargs = dict(dimension_semantics=("parallel",))
    if est_bytes > (14 << 20):   # above v5e's 16 MiB scoped default (w/ margin)
        try:
            cap = int(pltpu.get_tpu_info().vmem_capacity_bytes)
        except Exception:
            cap = 64 << 20       # v7x physical VMEM — safe cap everywhere
        cp_kwargs["vmem_limit_bytes"] = int(min(est_bytes * 3 // 2, cap * 9 // 10))

    kernel = _make_kernel(bb, T, D, H, O, L, bi)
    out3, of3, w3 = pl.pallas_call(
        kernel,
        grid=(nb,),
        out_shape=out_shape,
        in_specs=in_specs,
        out_specs=out_specs,
        scratch_shapes=scratch,
        compiler_params=pltpu.CompilerParams(**cp_kwargs),
    )(*inputs)

    out = out3.reshape(B_pad, O)[:B]
    out_final = of3.reshape(B_pad, HB)[:B]
    weight = w3.reshape(B_pad, T)[:B]
    out = jnp.squeeze(out)   # mirrors torch.squeeze(out)
    return out, length, out_final, weight


# ----------------------- deterministic parameter init -----------------------
def init_params(key, input_dim, hidden_dim, output_dim, num_layers, bi_num):
    keys = iter(jax.random.split(key, 4 * num_layers * bi_num + 3))
    k_lstm = 1.0 / np.sqrt(hidden_dim)
    lstm = []
    for _dl in range(bi_num):
        layers = []
        for li in range(num_layers):
            din = input_dim if li == 0 else hidden_dim
            wih = jax.random.uniform(next(keys), (4 * hidden_dim, din), jnp.float32, -k_lstm, k_lstm)
            whh = jax.random.uniform(next(keys), (4 * hidden_dim, hidden_dim), jnp.float32, -k_lstm, k_lstm)
            bih = jax.random.uniform(next(keys), (4 * hidden_dim,), jnp.float32, -k_lstm, k_lstm)
            bhh = jax.random.uniform(next(keys), (4 * hidden_dim,), jnp.float32, -k_lstm, k_lstm)
            layers.append((wih, whh, bih, bhh))
        lstm.append(layers)
    HB = hidden_dim * bi_num
    k2 = 1.0 / np.sqrt(HB)
    w2 = jax.random.uniform(next(keys), (output_dim, HB), jnp.float32, -k2, k2)
    b2 = jax.random.uniform(next(keys), (output_dim,), jnp.float32, -k2, k2)
    w_att = jax.random.uniform(next(keys), (1, HB), jnp.float32, -k2, k2)
    return lstm, w2, b2, w_att


# ----------------------- pure-numpy reference (PyTorch semantics) -----------
def _sigmoid(z):
    return 1.0 / (1.0 + np.exp(-z))


def _reverse_padded(a, length):
    out = np.array(a)
    for b, l in enumerate(length):
        out[b, :l] = a[b, :l][::-1]
    return out


def _lstm_dir(seq, params, H):
    B, T, _ = seq.shape
    inp = seq
    for (wih, whh, bih, bhh) in params:
        wih, whh = np.asarray(wih), np.asarray(whh)
        bih, bhh = np.asarray(bih), np.asarray(bhh)
        h = np.zeros((B, H), np.float32)
        c = np.zeros((B, H), np.float32)
        outs = np.zeros((B, T, H), np.float32)
        for t in range(T):
            g = inp[:, t, :] @ wih.T + h @ whh.T + bih + bhh
            i = _sigmoid(g[:, :H]); f = _sigmoid(g[:, H:2 * H])
            gg = np.tanh(g[:, 2 * H:3 * H]); o = _sigmoid(g[:, 3 * H:])
            c = f * c + i * gg
            h = o * np.tanh(c)
            outs[:, t, :] = h
        inp = outs
    return inp


def net_forward_ref(x, length, lstm_params, w_att, w2, b2, H, O, bi_num):
    x = np.asarray(x, np.float32)
    length = np.asarray(length)
    B, T, _ = x.shape
    outs = [_lstm_dir(x, lstm_params[0], H)]
    if bi_num == 2:
        xr = _reverse_padded(x, length)
        o1 = _lstm_dir(xr, lstm_params[1], H)
        outs.append(_reverse_padded(o1, length))
    out = np.concatenate(outs, axis=-1) if bi_num == 2 else outs[0]
    pot = (out @ np.asarray(w_att).T)[..., 0]                    # (B, T)
    weight = np.zeros((B, T), np.float32)
    for b, l in enumerate(length):
        p = pot[b, :l]
        e = np.exp(p - p.max())
        weight[b, :l] = e / e.sum()
    out_final = np.einsum('bt,bth->bh', weight, out)
    out_lin = out_final @ np.asarray(w2).T + np.asarray(b2)
    return np.squeeze(out_lin), out_final, weight


if __name__ == "__main__":
    B, T, D, H, O = 2, 8, 16, 32, 4
    num_layers, biFlag = 1, True
    bi_num = 2 if biFlag else 1

    key = jax.random.PRNGKey(0)
    kx, kp = jax.random.split(key)
    x = jax.random.normal(kx, (B, T, D), jnp.float32)
    length = jnp.array([8, 5], jnp.int32)          # sorted descending, max == T

    lstm_params, w2, b2, w_att = init_params(kp, D, H, O, num_layers, bi_num)

    out, length_out, out_final, weight = net_forward(
        x, length, lstm_params, w_att, w2, b2, H, O, num_layers, bi_num)
    jax.block_until_ready((out, out_final, weight))

    out_r, out_final_r, weight_r = net_forward_ref(
        x, length, lstm_params, w_att, w2, b2, H, O, bi_num)

    assert np.allclose(np.asarray(weight), weight_r, rtol=2e-2, atol=2e-2)
    assert np.allclose(np.asarray(out_final), out_final_r, rtol=2e-2, atol=2e-2)
    assert np.allclose(np.asarray(out), out_r, rtol=2e-2, atol=2e-2)

    print("KERNEL_OK")
</pallas_src>

<mosaic_0001>
module attributes {stable_mosaic.version = 11 : i64} {
  func.func @kernel(%arg0: i32, %arg1: memref<1x8x1xi32, #tpu.memory_space<vmem>>, %arg2: memref<1x64x16xf32, #tpu.memory_space<vmem>>, %arg3: memref<16x256xbf16, #tpu.memory_space<vmem>>, %arg4: memref<1x256xf32, #tpu.memory_space<vmem>>, %arg5: memref<64x256xbf16, #tpu.memory_space<vmem>>, %arg6: memref<1x64xf32, #tpu.memory_space<vmem>>, %arg7: memref<64x4xf32, #tpu.memory_space<vmem>>, %arg8: memref<1x4xf32, #tpu.memory_space<vmem>>, %arg9: memref<1x8x4xf32, #tpu.memory_space<vmem>>, %arg10: memref<1x8x64xf32, #tpu.memory_space<vmem>>, %arg11: memref<1x8x8xf32, #tpu.memory_space<vmem>>, %arg12: memref<8x8x256xf32, #tpu.memory_space<vmem>>, %arg13: memref<8x8x64xf32, #tpu.memory_space<vmem>>, %arg14: memref<8x8x64xf32, #tpu.memory_space<vmem>>) attributes {dimension_semantics = [#tpu.dimension_semantics<parallel>], iteration_bounds = array<i64: 1>, scalar_prefetch = 0 : i64, scratch_operands = 3 : i64, tpu.core_type = #tpu.core_type<tc>, window_params = [{transform_indices = @transform_0, window_bounds = array<i64: 1, 8, 1>}, {transform_indices = @transform_1, window_bounds = array<i64: 1, 64, 16>}, {pipeline_mode = #tpu.pipeline_mode<synchronous>, transform_indices = @transform_2, window_bounds = array<i64: 16, 256>}, {pipeline_mode = #tpu.pipeline_mode<synchronous>, transform_indices = @transform_3, window_bounds = array<i64: 1, 256>}, {pipeline_mode = #tpu.pipeline_mode<synchronous>, transform_indices = @transform_4, window_bounds = array<i64: 64, 256>}, {pipeline_mode = #tpu.pipeline_mode<synchronous>, transform_indices = @transform_5, window_bounds = array<i64: 1, 64>}, {pipeline_mode = #tpu.pipeline_mode<synchronous>, transform_indices = @transform_6, window_bounds = array<i64: 64, 4>}, {pipeline_mode = #tpu.pipeline_mode<synchronous>, transform_indices = @transform_7, window_bounds = array<i64: 1, 4>}, {transform_indices = @transform_8, window_bounds = array<i64: 1, 8, 4>}, {transform_indices = @transform_9, window_bounds = array<i64: 1, 8, 64>}, {transform_indices = @transform_10, window_bounds = array<i64: 1, 8, 8>}]} {
    %c0 = arith.constant 0 : index
    %c0_0 = arith.constant 0 : index
    %c0_1 = arith.constant 0 : index
    %0 = vector.load %arg1[%c0, %c0_0, %c0_1] : memref<1x8x1xi32, #tpu.memory_space<vmem>>, vector<1x8x1xi32>
    %1 = vector.shape_cast %0 : vector<1x8x1xi32> to vector<8x1xi32>
    %2 = tpu.iota {dimensions = array<i32: 1>} : vector<8x64xi32>
    %c32_i32 = arith.constant 32 : i32
    %3 = vector.broadcast %c32_i32 : i32 to vector<8x64xi32>
    %4 = arith.cmpi slt, %2, %3 : vector<8x64xi32>
    %5 = tpu.iota {dimensions = array<i32: 1>} : vector<8x256xi32>
    %c64_i32 = arith.constant 64 : i32
    %c0_i32 = arith.constant 0 : i32
    %6 = arith.cmpi eq, %c64_i32, %c0_i32 : i32
    %c1_i32 = arith.constant 1 : i32
    %7 = arith.select %6, %c1_i32, %c64_i32 : i32
    %8 = vector.broadcast %7 : i32 to vector<8x256xi32>
    %9 = arith.remsi %5, %8 : vector<8x256xi32>
    %c0_i32_2 = arith.constant 0 : i32
    %10 = vector.broadcast %c0_i32_2 : i32 to vector<8x256xi32>
    %11 = arith.cmpi ne, %9, %10 : vector<8x256xi32>
    %c0_i32_3 = arith.constant 0 : i32
    %12 = vector.broadcast %c0_i32_3 : i32 to vector<8x256xi32>
    %13 = arith.cmpi slt, %9, %12 : vector<8x256xi32>
    %c0_i32_4 = arith.constant 0 : i32
    %14 = arith.cmpi slt, %7, %c0_i32_4 : i32
    %15 = vector.broadcast %14 : i1 to vector<8x256xi1>
    %16 = vector.broadcast %15 : vector<8x256xi1> to vector<8x256xi1>
    %17 = arith.xori %13, %16 : vector<8x256xi1>
    %18 = arith.andi %17, %11 : vector<8x256xi1>
    %19 = vector.broadcast %7 : i32 to vector<8x256xi32>
    %20 = arith.addi %9, %19 : vector<8x256xi32>
    %21 = arith.select %18, %20, %9 : vector<8x256xi1>, vector<8x256xi32>
    %c32_i32_5 = arith.constant 32 : i32
    %22 = vector.broadcast %c32_i32_5 : i32 to vector<8x256xi32>
    %23 = arith.cmpi slt, %21, %22 : vector<8x256xi32>
    %c0_6 = arith.constant 0 : index
    %c0_7 = arith.constant 0 : index
    %c0_8 = arith.constant 0 : index
    %24 = vector.load %arg2[%c0_6, %c0_7, %c0_8] : memref<1x64x16xf32, #tpu.memory_space<vmem>>, vector<1x64x16xf32>
    %25 = vector.shape_cast %24 : vector<1x64x16xf32> to vector<64x16xf32>
    %26 = arith.truncf %25 : vector<64x16xf32> to vector<64x16xbf16>
    %c0_9 = arith.constant 0 : index
    %c0_10 = arith.constant 0 : index
    %27 = vector.load %arg3[%c0_9, %c0_10] : memref<16x256xbf16, #tpu.memory_space<vmem>>, vector<16x256xbf16>
    %cst = arith.constant dense<0.000000e+00> : vector<64x256xf32>
    %28 = tpu.matmul %26, %27, %cst {dimension_numbers = #tpu.dot_dimension_numbers<[1], [0], [0], [1], [0, 0, 1, 1], [], []>} : vector<64x16xbf16>, vector<16x256xbf16>, vector<64x256xf32> -> vector<64x256xf32>
    %c0_11 = arith.constant 0 : index
    %c0_12 = arith.constant 0 : index
    %29 = vector.load %arg4[%c0_11, %c0_12] : memref<1x256xf32, #tpu.memory_space<vmem>>, vector<1x256xf32>
    %30 = vector.broadcast %29 : vector<1x256xf32> to vector<64x256xf32>
    %31 = arith.addf %28, %30 : vector<64x256xf32>
    %32 = vector.shape_cast %31 : vector<64x256xf32> to vector<8x8x256xf32>
    %c0_13 = arith.constant 0 : index
    %c0_14 = arith.constant 0 : index
    %c0_15 = arith.constant 0 : index
    %33 = vector.load %arg12[%c0_13, %c0_14, %c0_15] : memref<8x8x256xf32, #tpu.memory_space<vmem>>, vector<8x8x256xf32>
    tpu.vector_store %arg12[%c0_13, %c0_14, %c0_15], %32 {strides = array<i32>} : memref<8x8x256xf32, #tpu.memory_space<vmem>>, vector<8x8x256xf32>,
    %c0_16 = arith.constant 0 : index
    %c0_17 = arith.constant 0 : index
    %34 = vector.load %arg5[%c0_16, %c0_17] : memref<64x256xbf16, #tpu.memory_space<vmem>>, vector<64x256xbf16>
    %cst_18 = arith.constant 0.000000e+00 : f32
    %35 = vector.broadcast %cst_18 : f32 to vector<8x64xf32>
    %cst_19 = arith.constant 0.000000e+00 : f32
    %36 = vector.broadcast %cst_19 : f32 to vector<8x64xf32>
    %c0_i32_20 = arith.constant 0 : i32
    %c7_i32 = arith.constant 7 : i32
    %37 = arith.subi %c7_i32, %c0_i32_20 : i32
    %38 = arith.truncf %35 : vector<8x64xf32> to vector<8x64xbf16>
    %cst_21 = arith.constant dense<0.000000e+00> : vector<8x256xf32>
    %39 = tpu.matmul %38, %34, %cst_21 {dimension_numbers = #tpu.dot_dimension_numbers<[1], [0], [0], [1], [0, 0, 1, 1], [], []>} : vector<8x64xbf16>, vector<64x256xbf16>, vector<8x256xf32> -> vector<8x256xf32>
    %40 = arith.index_cast %c0_i32_20 : i32 to index
    %c0_22 = arith.constant 0 : index
    %c0_23 = arith.constant 0 : index
    %41 = vector.load %arg12[%40, %c0_22, %c0_23] : memref<8x8x256xf32, #tpu.memory_space<vmem>>, vector<1x8x256xf32>
    %42 = vector.shape_cast %41 : vector<1x8x256xf32> to vector<8x256xf32>
    %43 = arith.index_cast %37 : i32 to index
    %c0_24 = arith.constant 0 : index
    %c0_25 = arith.constant 0 : index
    %44 = vector.load %arg12[%43, %c0_24, %c0_25] : memref<8x8x256xf32, #tpu.memory_space<vmem>>, vector<1x8x256xf32>
    %45 = vector.shape_cast %44 : vector<1x8x256xf32> to vector<8x256xf32>
    %46 = arith.select %23, %42, %45 : vector<8x256xi1>, vector<8x256xf32>
    %47 = vector.broadcast %c0_i32_20 : i32 to vector<8x64xi32>
    %48 = vector.broadcast %37 : i32 to vector<8x64xi32>
    %49 = arith.select %4, %47, %48 : vector<8x64xi1>, vector<8x64xi32>
    %50 = arith.addf %39, %46 : vector<8x256xf32>
    %51 = vector.extract_strided_slice %50 {offsets = [0, 0], sizes = [8, 64], strides = [1, 1]} : vector<8x256xf32> to vector<8x64xf32>
    %52 = arith.negf %51 : vector<8x64xf32>
    %53 = math.exp %52 : vector<8x64xf32>
    %cst_26 = arith.constant 1.000000e+00 : f32
    %54 = vector.broadcast %cst_26 : f32 to vector<8x64xf32>
    %55 = arith.addf %54, %53 : vector<8x64xf32>
    %56 = arith.divf %54, %55 : vector<8x64xf32>
    %57 = vector.extract_strided_slice %50 {offsets = [0, 64], sizes = [8, 64], strides = [1, 1]} : vector<8x256xf32> to vector<8x64xf32>
    %58 = arith.negf %57 : vector<8x64xf32>
    %59 = math.exp %58 : vector<8x64xf32>
    %cst_27 = arith.constant 1.000000e+00 : f32
    %60 = vector.broadcast %cst_27 : f32 to vector<8x64xf32>
    %61 = arith.addf %60, %59 : vector<8x64xf32>
    %62 = arith.divf %60, %61 : vector<8x64xf32>
    %63 = vector.extract_strided_slice %50 {offsets = [0, 128], sizes = [8, 64], strides = [1, 1]} : vector<8x256xf32> to vector<8x64xf32>
    %64 = math.tanh %63 : vector<8x64xf32>
    %65 = vector.extract_strided_slice %50 {offsets = [0, 192], sizes = [8, 64], strides = [1, 1]} : vector<8x256xf32> to vector<8x64xf32>
    %66 = arith.negf %65 : vector<8x64xf32>
    %67 = math.exp %66 : vector<8x64xf32>
    %cst_28 = arith.constant 1.000000e+00 : f32
    %68 = vector.broadcast %cst_28 : f32 to vector<8x64xf32>
    %69 = arith.addf %68, %67 : vector<8x64xf32>
    %70 = arith.divf %68, %69 : vector<8x64xf32>
    %71 = arith.mulf %62, %36 : vector<8x64xf32>
    %72 = arith.mulf %56, %64 : vector<8x64xf32>
    %73 = arith.addf %71, %72 : vector<8x64xf32>
    %74 = math.tanh %73 : vector<8x64xf32>
    %75 = arith.mulf %70, %74 : vector<8x64xf32>
    %76 = vector.broadcast %1 : vector<8x1xi32> to vector<8x64xi32>
    %77 = arith.cmpi sgt, %76, %49 : vector<8x64xi32>
    %78 = arith.select %77, %73, %36 : vector<8x64xi1>, vector<8x64xf32>
    %79 = arith.select %77, %75, %35 : vector<8x64xi1>, vector<8x64xf32>
    %80 = arith.index_cast %c0_i32_20 : i32 to index
    %c0_29 = arith.constant 0 : index
    %c0_30 = arith.constant 0 : index
    %81 = vector.load %arg13[%80, %c0_29, %c0_30] : memref<8x8x64xf32, #tpu.memory_space<vmem>>, vector<1x8x64xf32>
    %82 = vector.shape_cast %81 : vector<1x8x64xf32> to vector<8x64xf32>
    %83 = vector.shape_cast %79 : vector<8x64xf32> to vector<1x8x64xf32>
    tpu.vector_store %arg13[%80, %c0_29, %c0_30], %83 {strides = array<i32>} : memref<8x8x64xf32, #tpu.memory_space<vmem>>, vector<1x8x64xf32>,
    %84 = arith.index_cast %37 : i32 to index
    %c0_31 = arith.constant 0 : index
    %c0_32 = arith.constant 0 : index
    %85 = vector.load %arg14[%84, %c0_31, %c0_32] : memref<8x8x64xf32, #tpu.memory_space<vmem>>, vector<1x8x64xf32>
    %86 = vector.shape_cast %85 : vector<1x8x64xf32> to vector<8x64xf32>
    %87 = vector.shape_cast %79 : vector<8x64xf32> to vector<1x8x64xf32>
    tpu.vector_store %arg14[%84, %c0_31, %c0_32], %87 {strides = array<i32>} : memref<8x8x64xf32, #tpu.memory_space<vmem>>, vector<1x8x64xf32>,
    %c1_i32_33 = arith.constant 1 : i32
    %c7_i32_34 = arith.constant 7 : i32
    %88 = arith.subi %c7_i32_34, %c1_i32_33 : i32
    %89 = arith.truncf %79 : vector<8x64xf32> to vector<8x64xbf16>
    %cst_35 = arith.constant dense<0.000000e+00> : vector<8x256xf32>
    %90 = tpu.matmul %89, %34, %cst_35 {dimension_numbers = #tpu.dot_dimension_numbers<[1], [0], [0], [1], [0, 0, 1, 1], [], []>} : vector<8x64xbf16>, vector<64x256xbf16>, vector<8x256xf32> -> vector<8x256xf32>
    %91 = arith.index_cast %c1_i32_33 : i32 to index
    %c0_36 = arith.constant 0 : index
    %c0_37 = arith.constant 0 : index
    %92 = vector.load %arg12[%91, %c0_36, %c0_37] : memref<8x8x256xf32, #tpu.memory_space<vmem>>, vector<1x8x256xf32>
    %93 = vector.shape_cast %92 : vector<1x8x256xf32> to vector<8x256xf32>
    %94 = arith.index_cast %88 : i32 to index
    %c0_38 = arith.constant 0 : index
    %c0_39 = arith.constant 0 : index
    %95 = vector.load %arg12[%94, %c0_38, %c0_39] : memref<8x8x256xf32, #tpu.memory_space<vmem>>, vector<1x8x256xf32>
    %96 = vector.shape_cast %95 : vector<1x8x256xf32> to vector<8x256xf32>
    %97 = arith.select %23, %93, %96 : vector<8x256xi1>, vector<8x256xf32>
    %98 = vector.broadcast %c1_i32_33 : i32 to vector<8x64xi32>
    %99 = vector.broadcast %88 : i32 to vector<8x64xi32>
    %100 = arith.select %4, %98, %99 : vector<8x64xi1>, vector<8x64xi32>
    %101 = arith.addf %90, %97 : vector<8x256xf32>
    %102 = vector.extract_strided_slice %101 {offsets = [0, 0], sizes = [8, 64], strides = [1, 1]} : vector<8x256xf32> to vector<8x64xf32>
    %103 = arith.negf %102 : vector<8x64xf32>
    %104 = math.exp %103 : vector<8x64xf32>
    %cst_40 = arith.constant 1.000000e+00 : f32
    %105 = vector.broadcast %cst_40 : f32 to vector<8x64xf32>
    %106 = arith.addf %105, %104 : vector<8x64xf32>
    %107 = arith.divf %105, %106 : vector<8x64xf32>
    %108 = vector.extract_strided_slice %101 {offsets = [0, 64], sizes = [8, 64], strides = [1, 1]} : vector<8x256xf32> to vector<8x64xf32>
    %109 = arith.negf %108 : vector<8x64xf32>
    %110 = math.exp %109 : vector<8x64xf32>
    %cst_41 = arith.constant 1.000000e+00 : f32
    %111 = vector.broadcast %cst_41 : f32 to vector<8x64xf32>
    %112 = arith.addf %111, %110 : vector<8x64xf32>
    %113 = arith.divf %111, %112 : vector<8x64xf32>
    %114 = vector.extract_strided_slice %101 {offsets = [0, 128], sizes = [8, 64], strides = [1, 1]} : vector<8x256xf32> to vector<8x64xf32>
    %115 = math.tanh %114 : vector<8x64xf32>
    %116 = vector.extract_strided_slice %101 {offsets = [0, 192], sizes = [8, 64], strides = [1, 1]} : vector<8x256xf32> to vector<8x64xf32>
    %117 = arith.negf %116 : vector<8x64xf32>
    %118 = math.exp %117 : vector<8x64xf32>
    %cst_42 = arith.constant 1.000000e+00 : f32
    %119 = vector.broadcast %cst_42 : f32 to vector<8x64xf32>
    %120 = arith.addf %119, %118 : vector<8x64xf32>
    %121 = arith.divf %119, %120 : vector<8x64xf32>
    %122 = arith.mulf %113, %78 : vector<8x64xf32>
    %123 = arith.mulf %107, %115 : vector<8x64xf32>
    %124 = arith.addf %122, %123 : vector<8x64xf32>
    %125 = math.tanh %124 : vector<8x64xf32>
    %126 = arith.mulf %121, %125 : vector<8x64xf32>
    %127 = vector.broadcast %1 : vector<8x1xi32> to vector<8x64xi32>
    %128 = arith.cmpi sgt, %127, %100 : vector<8x64xi32>
    %129 = arith.select %128, %124, %78 : vector<8x64xi1>, vector<8x64xf32>
    %130 = arith.select %128, %126, %79 : vector<8x64xi1>, vector<8x64xf32>
    %131 = arith.index_cast %c1_i32_33 : i32 to index
    %c0_43 = arith.constant 0 : index
    %c0_44 = arith.constant 0 : index
    %132 = vector.load %arg13[%131, %c0_43, %c0_44] : memref<8x8x64xf32, #tpu.memory_space<vmem>>, vector<1x8x64xf32>
    %133 = vector.shape_cast %132 : vector<1x8x64xf32> to vector<8x64xf32>
    %134 = vector.shape_cast %130 : vector<8x64xf32> to vector<1x8x64xf32>
    tpu.vector_store %arg13[%131, %c0_43, %c0_44], %134 {strides = array<i32>} : memref<8x8x64xf32, #tpu.memory_space<vmem>>, vector<1x8x64xf32>,
    %135 = arith.index_cast %88 : i32 to index
    %c0_45 = arith.constant 0 : index
    %c0_46 = arith.constant 0 : index
    %136 = vector.load %arg14[%135, %c0_45, %c0_46] : memref<8x8x64xf32, #tpu.memory_space<vmem>>, vector<1x8x64xf32>
    %137 = vector.shape_cast %136 : vector<1x8x64xf32> to vector<8x64xf32>
    %138 = vector.shape_cast %130 : vector<8x64xf32> to vector<1x8x64xf32>
    tpu.vector_store %arg14[%135, %c0_45, %c0_46], %138 {strides = array<i32>} : memref<8x8x64xf32, #tpu.memory_space<vmem>>, vector<1x8x64xf32>,
    %c2_i32 = arith.constant 2 : i32
    %c7_i32_47 = arith.constant 7 : i32
    %139 = arith.subi %c7_i32_47, %c2_i32 : i32
    %140 = arith.truncf %130 : vector<8x64xf32> to vector<8x64xbf16>
    %cst_48 = arith.constant dense<0.000000e+00> : vector<8x256xf32>
    %141 = tpu.matmul %140, %34, %cst_48 {dimension_numbers = #tpu.dot_dimension_numbers<[1], [0], [0], [1], [0, 0, 1, 1], [], []>} : vector<8x64xbf16>, vector<64x256xbf16>, vector<8x256xf32> -> vector<8x256xf32>
    %142 = arith.index_cast %c2_i32 : i32 to index
    %c0_49 = arith.constant 0 : index
    %c0_50 = arith.constant 0 : index
    %143 = vector.load %arg12[%142, %c0_49, %c0_50] : memref<8x8x256xf32, #tpu.memory_space<vmem>>, vector<1x8x256xf32>
    %144 = vector.shape_cast %143 : vector<1x8x256xf32> to vector<8x256xf32>
    %145 = arith.index_cast %139 : i32 to index
    %c0_51 = arith.constant 0 : index
    %c0_52 = arith.constant 0 : index
    %146 = vector.load %arg12[%145, %c0_51, %c0_52] : memref<8x8x256xf32, #tpu.memory_space<vmem>>, vector<1x8x256xf32>
    %147 = vector.shape_cast %146 : vector<1x8x256xf32> to vector<8x256xf32>
    %148 = arith.select %23, %144, %147 : vector<8x256xi1>, vector<8x256xf32>
    %149 = vector.broadcast %c2_i32 : i32 to vector<8x64xi32>
    %150 = vector.broadcast %139 : i32 to vector<8x64xi32>
    %151 = arith.select %4, %149, %150 : vector<8x64xi1>, vector<8x64xi32>
    %152 = arith.addf %141, %148 : vector<8x256xf32>
    %153 = vector.extract_strided_slice %152 {offsets = [0, 0], sizes = [8, 64], strides = [1, 1]} : vector<8x256xf32> to vector<8x64xf32>
    %154 = arith.negf %153 : vector<8x64xf32>
    %155 = math.exp %154 : vector<8x64xf32>
    %cst_53 = arith.constant 1.000000e+00 : f32
    %156 = vector.broadcast %cst_53 : f32 to vector<8x64xf32>
    %157 = arith.addf %156, %155 : vector<8x64xf32>
    %158 = arith.divf %156, %157 : vector<8x64xf32>
    %159 = vector.extract_strided_slice %152 {offsets = [0, 64], sizes = [8, 64], strides = [1, 1]} : vector<8x256xf32> to vector<8x64xf32>
    %160 = arith.negf %159 : vector<8x64xf32>
    %161 = math.exp %160 : vector<8x64xf32>
    %cst_54 = arith.constant 1.000000e+00 : f32
    %162 = vector.broadcast %cst_54 : f32 to vector<8x64xf32>
    %163 = arith.addf %162, %161 : vector<8x64xf32>
    %164 = arith.divf %162, %163 : vector<8x64xf32>
    %165 = vector.extract_strided_slice %152 {offsets = [0, 128], sizes = [8, 64], strides = [1, 1]} : vector<8x256xf32> to vector<8x64xf32>
    %166 = math.tanh %165 : vector<8x64xf32>
    %167 = vector.extract_strided_slice %152 {offsets = [0, 192], sizes = [8, 64], strides = [1, 1]} : vector<8x256xf32> to vector<8x64xf32>
    %168 = arith.negf %167 : vector<8x64xf32>
    %169 = math.exp %168 : vector<8x64xf32>
    %cst_55 = arith.constant 1.000000e+00 : f32
    %170 = vector.broadcast %cst_55 : f32 to vector<8x64xf32>
    %171 = arith.addf %170, %169 : vector<8x64xf32>
    %172 = arith.divf %170, %171 : vector<8x64xf32>
    %173 = arith.mulf %164, %129 : vector<8x64xf32>
    %174 = arith.mulf %158, %166 : vector<8x64xf32>
    %175 = arith.addf %173, %174 : vector<8x64xf32>
    %176 = math.tanh %175 : vector<8x64xf32>
    %177 = arith.mulf %172, %176 : vector<8x64xf32>
    %178 = vector.broadcast %1 : vector<8x1xi32> to vector<8x64xi32>
    %179 = arith.cmpi sgt, %178, %151 : vector<8x64xi32>
    %180 = arith.select %179, %175, %129 : vector<8x64xi1>, vector<8x64xf32>
    %181 = arith.select %179, %177, %130 : vector<8x64xi1>, vector<8x64xf32>
    %182 = arith.index_cast %c2_i32 : i32 to index
    %c0_56 = arith.constant 0 : index
    %c0_57 = arith.constant 0 : index
    %183 = vector.load %arg13[%182, %c0_56, %c0_57] : memref<8x8x64xf32, #tpu.memory_space<vmem>>, vector<1x8x64xf32>
    %184 = vector.shape_cast %183 : vector<1x8x64xf32> to vector<8x64xf32>
    %185 = vector.shape_cast %181 : vector<8x64xf32> to vector<1x8x64xf32>
    tpu.vector_store %arg13[%182, %c0_56, %c0_57], %185 {strides = array<i32>} : memref<8x8x64xf32, #tpu.memory_space<vmem>>, vector<1x8x64xf32>,
    %186 = arith.index_cast %139 : i32 to index
    %c0_58 = arith.constant 0 : index
    %c0_59 = arith.constant 0 : index
    %187 = vector.load %arg14[%186, %c0_58, %c0_59] : memref<8x8x64xf32, #tpu.memory_space<vmem>>, vector<1x8x64xf32>
    %188 = vector.shape_cast %187 : vector<1x8x64xf32> to vector<8x64xf32>
    %189 = vector.shape_cast %181 : vector<8x64xf32> to vector<1x8x64xf32>
    tpu.vector_store %arg14[%186, %c0_58, %c0_59], %189 {strides = array<i32>} : memref<8x8x64xf32, #tpu.memory_space<vmem>>, vector<1x8x64xf32>,
    %c3_i32 = arith.constant 3 : i32
    %c7_i32_60 = arith.constant 7 : i32
    %190 = arith.subi %c7_i32_60, %c3_i32 : i32
    %191 = arith.truncf %181 : vector<8x64xf32> to vector<8x64xbf16>
    %cst_61 = arith.constant dense<0.000000e+00> : vector<8x256xf32>
    %192 = tpu.matmul %191, %34, %cst_61 {dimension_numbers = #tpu.dot_dimension_numbers<[1], [0], [0], [1], [0, 0, 1, 1], [], []>} : vector<8x64xbf16>, vector<64x256xbf16>, vector<8x256xf32> -> vector<8x256xf32>
    %193 = arith.index_cast %c3_i32 : i32 to index
    %c0_62 = arith.constant 0 : index
    %c0_63 = arith.constant 0 : index
    %194 = vector.load %arg12[%193, %c0_62, %c0_63] : memref<8x8x256xf32, #tpu.memory_space<vmem>>, vector<1x8x256xf32>
    %195 = vector.shape_cast %194 : vector<1x8x256xf32> to vector<8x256xf32>
    %196 = arith.index_cast %190 : i32 to index
    %c0_64 = arith.constant 0 : index
    %c0_65 = arith.constant 0 : index
    %197 = vector.load %arg12[%196, %c0_64, %c0_65] : memref<8x8x256xf32, #tpu.memory_space<vmem>>, vector<1x8x256xf32>
    %198 = vector.shape_cast %197 : vector<1x8x256xf32> to vector<8x256xf32>
    %199 = arith.select %23, %195, %198 : vector<8x256xi1>, vector<8x256xf32>
    %200 = vector.broadcast %c3_i32 : i32 to vector<8x64xi32>
    %201 = vector.broadcast %190 : i32 to vector<8x64xi32>
    %202 = arith.select %4, %200, %201 : vector<8x64xi1>, vector<8x64xi32>
    %203 = arith.addf %192, %199 : vector<8x256xf32>
    %204 = vector.extract_strided_slice %203 {offsets = [0, 0], sizes = [8, 64], strides = [1, 1]} : vector<8x256xf32> to vector<8x64xf32>
    %205 = arith.negf %204 : vector<8x64xf32>
    %206 = math.exp %205 : vector<8x64xf32>
    %cst_66 = arith.constant 1.000000e+00 : f32
    %207 = vector.broadcast %cst_66 : f32 to vector<8x64xf32>
    %208 = arith.addf %207, %206 : vector<8x64xf32>
    %209 = arith.divf %207, %208 : vector<8x64xf32>
    %210 = vector.extract_strided_slice %203 {offsets = [0, 64], sizes = [8, 64], strides = [1, 1]} : vector<8x256xf32> to vector<8x64xf32>
    %211 = arith.negf %210 : vector<8x64xf32>
    %212 = math.exp %211 : vector<8x64xf32>
    %cst_67 = arith.constant 1.000000e+00 : f32
    %213 = vector.broadcast %cst_67 : f32 to vector<8x64xf32>
    %214 = arith.addf %213, %212 : vector<8x64xf32>
    %215 = arith.divf %213, %214 : vector<8x64xf32>
    %216 = vector.extract_strided_slice %203 {offsets = [0, 128], sizes = [8, 64], strides = [1, 1]} : vector<8x256xf32> to vector<8x64xf32>
    %217 = math.tanh %216 : vector<8x64xf32>
    %218 = vector.extract_strided_slice %203 {offsets = [0, 192], sizes = [8, 64], strides = [1, 1]} : vector<8x256xf32> to vector<8x64xf32>
    %219 = arith.negf %218 : vector<8x64xf32>
    %220 = math.exp %219 : vector<8x64xf32>
    %cst_68 = arith.constant 1.000000e+00 : f32
    %221 = vector.broadcast %cst_68 : f32 to vector<8x64xf32>
    %222 = arith.addf %221, %220 : vector<8x64xf32>
    %223 = arith.divf %221, %222 : vector<8x64xf32>
    %224 = arith.mulf %215, %180 : vector<8x64xf32>
    %225 = arith.mulf %209, %217 : vector<8x64xf32>
    %226 = arith.addf %224, %225 : vector<8x64xf32>
    %227 = math.tanh %226 : vector<8x64xf32>
    %228 = arith.mulf %223, %227 : vector<8x64xf32>
    %229 = vector.broadcast %1 : vector<8x1xi32> to vector<8x64xi32>
    %230 = arith.cmpi sgt, %229, %202 : vector<8x64xi32>
    %231 = arith.select %230, %226, %180 : vector<8x64xi1>, vector<8x64xf32>
    %232 = arith.select %230, %228, %181 : vector<8x64xi1>, vector<8x64xf32>
    %233 = arith.index_cast %c3_i32 : i32 to index
    %c0_69 = arith.constant 0 : index
    %c0_70 = arith.constant 0 : index
    %234 = vector.load %arg13[%233, %c0_69, %c0_70] : memref<8x8x64xf32, #tpu.memory_space<vmem>>, vector<1x8x64xf32>
    %235 = vector.shape_cast %234 : vector<1x8x64xf32> to vector<8x64xf32>
    %236 = vector.shape_cast %232 : vector<8x64xf32> to vector<1x8x64xf32>
    tpu.vector_store %arg13[%233, %c0_69, %c0_70], %236 {strides = array<i32>} : memref<8x8x64xf32, #tpu.memory_space<vmem>>, vector<1x8x64xf32>,
    %237 = arith.index_cast %190 : i32 to index
    %c0_71 = arith.constant 0 : index
    %c0_72 = arith.constant 0 : index
    %238 = vector.load %arg14[%237, %c0_71, %c0_72] : memref<8x8x64xf32, #tpu.memory_space<vmem>>, vector<1x8x64xf32>
    %239 = vector.shape_cast %238 : vector<1x8x64xf32> to vector<8x64xf32>
    %240 = vector.shape_cast %232 : vector<8x64xf32> to vector<1x8x64xf32>
    tpu.vector_store %arg14[%237, %c0_71, %c0_72], %240 {strides = array<i32>} : memref<8x8x64xf32, #tpu.memory_space<vmem>>, vector<1x8x64xf32>,
    %c4_i32 = arith.constant 4 : i32
    %c7_i32_73 = arith.constant 7 : i32
    %241 = arith.subi %c7_i32_73, %c4_i32 : i32
    %242 = arith.truncf %232 : vector<8x64xf32> to vector<8x64xbf16>
    %cst_74 = arith.constant dense<0.000000e+00> : vector<8x256xf32>
    %243 = tpu.matmul %242, %34, %cst_74 {dimension_numbers = #tpu.dot_dimension_numbers<[1], [0], [0], [1], [0, 0, 1, 1], [], []>} : vector<8x64xbf16>, vector<64x256xbf16>, vector<8x256xf32> -> vector<8x256xf32>
    %244 = arith.index_cast %c4_i32 : i32 to index
    %c0_75 = arith.constant 0 : index
    %c0_76 = arith.constant 0 : index
    %245 = vector.load %arg12[%244, %c0_75, %c0_76] : memref<8x8x256xf32, #tpu.memory_space<vmem>>, vector<1x8x256xf32>
    %246 = vector.shape_cast %245 : vector<1x8x256xf32> to vector<8x256xf32>
    %247 = arith.index_cast %241 : i32 to index
    %c0_77 = arith.constant 0 : index
    %c0_78 = arith.constant 0 : index
    %248 = vector.load %arg12[%247, %c0_77, %c0_78] : memref<8x8x256xf32, #tpu.memory_space<vmem>>, vector<1x8x256xf32>
    %249 = vector.shape_cast %248 : vector<1x8x256xf32> to vector<8x256xf32>
    %250 = arith.select %23, %246, %249 : vector<8x256xi1>, vector<8x256xf32>
    %251 = vector.broadcast %c4_i32 : i32 to vector<8x64xi32>
    %252 = vector.broadcast %241 : i32 to vector<8x64xi32>
    %253 = arith.select %4, %251, %252 : vector<8x64xi1>, vector<8x64xi32>
    %254 = arith.addf %243, %250 : vector<8x256xf32>
    %255 = vector.extract_strided_slice %254 {offsets = [0, 0], sizes = [8, 64], strides = [1, 1]} : vector<8x256xf32> to vector<8x64xf32>
    %256 = arith.negf %255 : vector<8x64xf32>
    %257 = math.exp %256 : vector<8x64xf32>
    %cst_79 = arith.constant 1.000000e+00 : f32
    %258 = vector.broadcast %cst_79 : f32 to vector<8x64xf32>
    %259 = arith.addf %258, %257 : vector<8x64xf32>
    %260 = arith.divf %258, %259 : vector<8x64xf32>
    %261 = vector.extract_strided_slice %254 {offsets = [0, 64], sizes = [8, 64], strides = [1, 1]} : vector<8x256xf32> to vector<8x64xf32>
    %262 = arith.negf %261 : vector<8x64xf32>
    %263 = math.exp %262 : vector<8x64xf32>
    %cst_80 = arith.constant 1.000000e+00 : f32
    %264 = vector.broadcast %cst_80 : f32 to vector<8x64xf32>
    %265 = arith.addf %264, %263 : vector<8x64xf32>
    %266 = arith.divf %264, %265 : vector<8x64xf32>
    %267 = vector.extract_strided_slice %254 {offsets = [0, 128], sizes = [8, 64], strides = [1, 1]} : vector<8x256xf32> to vector<8x64xf32>
    %268 = math.tanh %267 : vector<8x64xf32>
    %269 = vector.extract_strided_slice %254 {offsets = [0, 192], sizes = [8, 64], strides = [1, 1]} : vector<8x256xf32> to vector<8x64xf32>
    %270 = arith.negf %269 : vector<8x64xf32>
    %271 = math.exp %270 : vector<8x64xf32>
    %cst_81 = arith.constant 1.000000e+00 : f32
    %272 = vector.broadcast %cst_81 : f32 to vector<8x64xf32>
    %273 = arith.addf %272, %271 : vector<8x64xf32>
    %274 = arith.divf %272, %273 : vector<8x64xf32>
    %275 = arith.mulf %266, %231 : vector<8x64xf32>
    %276 = arith.mulf %260, %268 : vector<8x64xf32>
    %277 = arith.addf %275, %276 : vector<8x64xf32>
    %278 = math.tanh %277 : vector<8x64xf32>
    %279 = arith.mulf %274, %278 : vector<8x64xf32>
    %280 = vector.broadcast %1 : vector<8x1xi32> to vector<8x64xi32>
    %281 = arith.cmpi sgt, %280, %253 : vector<8x64xi32>
    %282 = arith.select %281, %277, %231 : vector<8x64xi1>, vector<8x64xf32>
    %283 = arith.select %281, %279, %232 : vector<8x64xi1>, vector<8x64xf32>
    %284 = arith.index_cast %c4_i32 : i32 to index
    %c0_82 = arith.constant 0 : index
    %c0_83 = arith.constant 0 : index
    %285 = vector.load %arg13[%284, %c0_82, %c0_83] : memref<8x8x64xf32, #tpu.memory_space<vmem>>, vector<1x8x64xf32>
    %286 = vector.shape_cast %285 : vector<1x8x64xf32> to vector<8x64xf32>
    %287 = vector.shape_cast %283 : vector<8x64xf32> to vector<1x8x64xf32>
    tpu.vector_store %arg13[%284, %c0_82, %c0_83], %287 {strides = array<i32>} : memref<8x8x64xf32, #tpu.memory_space<vmem>>, vector<1x8x64xf32>,
    %288 = arith.index_cast %241 : i32 to index
    %c0_84 = arith.constant 0 : index
    %c0_85 = arith.constant 0 : index
    %289 = vector.load %arg14[%288, %c0_84, %c0_85] : memref<8x8x64xf32, #tpu.memory_space<vmem>>, vector<1x8x64xf32>
    %290 = vector.shape_cast %289 : vector<1x8x64xf32> to vector<8x64xf32>
    %291 = vector.shape_cast %283 : vector<8x64xf32> to vector<1x8x64xf32>
    tpu.vector_store %arg14[%288, %c0_84, %c0_85], %291 {strides = array<i32>} : memref<8x8x64xf32, #tpu.memory_space<vmem>>, vector<1x8x64xf32>,
    %c5_i32 = arith.constant 5 : i32
    %c7_i32_86 = arith.constant 7 : i32
    %292 = arith.subi %c7_i32_86, %c5_i32 : i32
    %293 = arith.truncf %283 : vector<8x64xf32> to vector<8x64xbf16>
    %cst_87 = arith.constant dense<0.000000e+00> : vector<8x256xf32>
    %294 = tpu.matmul %293, %34, %cst_87 {dimension_numbers = #tpu.dot_dimension_numbers<[1], [0], [0], [1], [0, 0, 1, 1], [], []>} : vector<8x64xbf16>, vector<64x256xbf16>, vector<8x256xf32> -> vector<8x256xf32>
    %295 = arith.index_cast %c5_i32 : i32 to index
    %c0_88 = arith.constant 0 : index
    %c0_89 = arith.constant 0 : index
    %296 = vector.load %arg12[%295, %c0_88, %c0_89] : memref<8x8x256xf32, #tpu.memory_space<vmem>>, vector<1x8x256xf32>
    %297 = vector.shape_cast %296 : vector<1x8x256xf32> to vector<8x256xf32>
    %298 = arith.index_cast %292 : i32 to index
    %c0_90 = arith.constant 0 : index
    %c0_91 = arith.constant 0 : index
    %299 = vector.load %arg12[%298, %c0_90, %c0_91] : memref<8x8x256xf32, #tpu.memory_space<vmem>>, vector<1x8x256xf32>
    %300 = vector.shape_cast %299 : vector<1x8x256xf32> to vector<8x256xf32>
    %301 = arith.select %23, %297, %300 : vector<8x256xi1>, vector<8x256xf32>
    %302 = vector.broadcast %c5_i32 : i32 to vector<8x64xi32>
    %303 = vector.broadcast %292 : i32 to vector<8x64xi32>
    %304 = arith.select %4, %302, %303 : vector<8x64xi1>, vector<8x64xi32>
    %305 = arith.addf %294, %301 : vector<8x256xf32>
    %306 = vector.extract_strided_slice %305 {offsets = [0, 0], sizes = [8, 64], strides = [1, 1]} : vector<8x256xf32> to vector<8x64xf32>
    %307 = arith.negf %306 : vector<8x64xf32>
    %308 = math.exp %307 : vector<8x64xf32>
    %cst_92 = arith.constant 1.000000e+00 : f32
    %309 = vector.broadcast %cst_92 : f32 to vector<8x64xf32>
    %310 = arith.addf %309, %308 : vector<8x64xf32>
    %311 = arith.divf %309, %310 : vector<8x64xf32>
    %312 = vector.extract_strided_slice %305 {offsets = [0, 64], sizes = [8, 64], strides = [1, 1]} : vector<8x256xf32> to vector<8x64xf32>
    %313 = arith.negf %312 : vector<8x64xf32>
    %314 = math.exp %313 : vector<8x64xf32>
    %cst_93 = arith.constant 1.000000e+00 : f32
    %315 = vector.broadcast %cst_93 : f32 to vector<8x64xf32>
    %316 = arith.addf %315, %314 : vector<8x64xf32>
    %317 = arith.divf %315, %316 : vector<8x64xf32>
    %318 = vector.extract_strided_slice %305 {offsets = [0, 128], sizes = [8, 64], strides = [1, 1]} : vector<8x256xf32> to vector<8x64xf32>
    %319 = math.tanh %318 : vector<8x64xf32>
    %320 = vector.extract_strided_slice %305 {offsets = [0, 192], sizes = [8, 64], strides = [1, 1]} : vector<8x256xf32> to vector<8x64xf32>
    %321 = arith.negf %320 : vector<8x64xf32>
    %322 = math.exp %321 : vector<8x64xf32>
    %cst_94 = arith.constant 1.000000e+00 : f32
    %323 = vector.broadcast %cst_94 : f32 to vector<8x64xf32>
    %324 = arith.addf %323, %322 : vector<8x64xf32>
    %325 = arith.divf %323, %324 : vector<8x64xf32>
    %326 = arith.mulf %317, %282 : vector<8x64xf32>
    %327 = arith.mulf %311, %319 : vector<8x64xf32>
    %328 = arith.addf %326, %327 : vector<8x64xf32>
    %329 = math.tanh %328 : vector<8x64xf32>
    %330 = arith.mulf %325, %329 : vector<8x64xf32>
    %331 = vector.broadcast %1 : vector<8x1xi32> to vector<8x64xi32>
    %332 = arith.cmpi sgt, %331, %304 : vector<8x64xi32>
    %333 = arith.select %332, %328, %282 : vector<8x64xi1>, vector<8x64xf32>
    %334 = arith.select %332, %330, %283 : vector<8x64xi1>, vector<8x64xf32>
    %335 = arith.index_cast %c5_i32 : i32 to index
    %c0_95 = arith.constant 0 : index
    %c0_96 = arith.constant 0 : index
    %336 = vector.load %arg13[%335, %c0_95, %c0_96] : memref<8x8x64xf32, #tpu.memory_space<vmem>>, vector<1x8x64xf32>
    %337 = vector.shape_cast %336 : vector<1x8x64xf32> to vector<8x64xf32>
    %338 = vector.shape_cast %334 : vector<8x64xf32> to vector<1x8x64xf32>
    tpu.vector_store %arg13[%335, %c0_95, %c0_96], %338 {strides = array<i32>} : memref<8x8x64xf32, #tpu.memory_space<vmem>>, vector<1x8x64xf32>,
    %339 = arith.index_cast %292 : i32 to index
    %c0_97 = arith.constant 0 : index
    %c0_98 = arith.constant 0 : index
    %340 = vector.load %arg14[%339, %c0_97, %c0_98] : memref<8x8x64xf32, #tpu.memory_space<vmem>>, vector<1x8x64xf32>
    %341 = vector.shape_cast %340 : vector<1x8x64xf32> to vector<8x64xf32>
    %342 = vector.shape_cast %334 : vector<8x64xf32> to vector<1x8x64xf32>
    tpu.vector_store %arg14[%339, %c0_97, %c0_98], %342 {strides = array<i32>} : memref<8x8x64xf32, #tpu.memory_space<vmem>>, vector<1x8x64xf32>,
    %c6_i32 = arith.constant 6 : i32
    %c7_i32_99 = arith.constant 7 : i32
    %343 = arith.subi %c7_i32_99, %c6_i32 : i32
    %344 = arith.truncf %334 : vector<8x64xf32> to vector<8x64xbf16>
    %cst_100 = arith.constant dense<0.000000e+00> : vector<8x256xf32>
    %345 = tpu.matmul %344, %34, %cst_100 {dimension_numbers = #tpu.dot_dimension_numbers<[1], [0], [0], [1], [0, 0, 1, 1], [], []>} : vector<8x64xbf16>, vector<64x256xbf16>, vector<8x256xf32> -> vector<8x256xf32>
    %346 = arith.index_cast %c6_i32 : i32 to index
    %c0_101 = arith.constant 0 : index
    %c0_102 = arith.constant 0 : index
    %347 = vector.load %arg12[%346, %c0_101, %c0_102] : memref<8x8x256xf32, #tpu.memory_space<vmem>>, vector<1x8x256xf32>
    %348 = vector.shape_cast %347 : vector<1x8x256xf32> to vector<8x256xf32>
    %349 = arith.index_cast %343 : i32 to index
    %c0_103 = arith.constant 0 : index
    %c0_104 = arith.constant 0 : index
    %350 = vector.load %arg12[%349, %c0_103, %c0_104] : memref<8x8x256xf32, #tpu.memory_space<vmem>>, vector<1x8x256xf32>
    %351 = vector.shape_cast %350 : vector<1x8x256xf32> to vector<8x256xf32>
    %352 = arith.select %23, %348, %351 : vector<8x256xi1>, vector<8x256xf32>
    %353 = vector.broadcast %c6_i32 : i32 to vector<8x64xi32>
    %354 = vector.broadcast %343 : i32 to vector<8x64xi32>
    %355 = arith.select %4, %353, %354 : vector<8x64xi1>, vector<8x64xi32>
    %356 = arith.addf %345, %352 : vector<8x256xf32>
    %357 = vector.extract_strided_slice %356 {offsets = [0, 0], sizes = [8, 64], strides = [1, 1]} : vector<8x256xf32> to vector<8x64xf32>
    %358 = arith.negf %357 : vector<8x64xf32>
    %359 = math.exp %358 : vector<8x64xf32>
    %cst_105 = arith.constant 1.000000e+00 : f32
    %360 = vector.broadcast %cst_105 : f32 to vector<8x64xf32>
    %361 = arith.addf %360, %359 : vector<8x64xf32>
    %362 = arith.divf %360, %361 : vector<8x64xf32>
    %363 = vector.extract_strided_slice %356 {offsets = [0, 64], sizes = [8, 64], strides = [1, 1]} : vector<8x256xf32> to vector<8x64xf32>
    %364 = arith.negf %363 : vector<8x64xf32>
    %365 = math.exp %364 : vector<8x64xf32>
    %cst_106 = arith.constant 1.000000e+00 : f32
    %366 = vector.broadcast %cst_106 : f32 to vector<8x64xf32>
    %367 = arith.addf %366, %365 : vector<8x64xf32>
    %368 = arith.divf %366, %367 : vector<8x64xf32>
    %369 = vector.extract_strided_slice %356 {offsets = [0, 128], sizes = [8, 64], strides = [1, 1]} : vector<8x256xf32> to vector<8x64xf32>
    %370 = math.tanh %369 : vector<8x64xf32>
    %371 = vector.extract_strided_slice %356 {offsets = [0, 192], sizes = [8, 64], strides = [1, 1]} : vector<8x256xf32> to vector<8x64xf32>
    %372 = arith.negf %371 : vector<8x64xf32>
    %373 = math.exp %372 : vector<8x64xf32>
    %cst_107 = arith.constant 1.000000e+00 : f32
    %374 = vector.broadcast %cst_107 : f32 to vector<8x64xf32>
    %375 = arith.addf %374, %373 : vector<8x64xf32>
    %376 = arith.divf %374, %375 : vector<8x64xf32>
    %377 = arith.mulf %368, %333 : vector<8x64xf32>
    %378 = arith.mulf %362, %370 : vector<8x64xf32>
    %379 = arith.addf %377, %378 : vector<8x64xf32>
    %380 = math.tanh %379 : vector<8x64xf32>
    %381 = arith.mulf %376, %380 : vector<8x64xf32>
    %382 = vector.broadcast %1 : vector<8x1xi32> to vector<8x64xi32>
    %383 = arith.cmpi sgt, %382, %355 : vector<8x64xi32>
    %384 = arith.select %383, %379, %333 : vector<8x64xi1>, vector<8x64xf32>
    %385 = arith.select %383, %381, %334 : vector<8x64xi1>, vector<8x64xf32>
    %386 = arith.index_cast %c6_i32 : i32 to index
    %c0_108 = arith.constant 0 : index
    %c0_109 = arith.constant 0 : index
    %387 = vector.load %arg13[%386, %c0_108, %c0_109] : memref<8x8x64xf32, #tpu.memory_space<vmem>>, vector<1x8x64xf32>
    %388 = vector.shape_cast %387 : vector<1x8x64xf32> to vector<8x64xf32>
    %389 = vector.shape_cast %385 : vector<8x64xf32> to vector<1x8x64xf32>
    tpu.vector_store %arg13[%386, %c0_108, %c0_109], %389 {strides = array<i32>} : memref<8x8x64xf32, #tpu.memory_space<vmem>>, vector<1x8x64xf32>,
    %390 = arith.index_cast %343 : i32 to index
    %c0_110 = arith.constant 0 : index
    %c0_111 = arith.constant 0 : index
    %391 = vector.load %arg14[%390, %c0_110, %c0_111] : memref<8x8x64xf32, #tpu.memory_space<vmem>>, vector<1x8x64xf32>
    %392 = vector.shape_cast %391 : vector<1x8x64xf32> to vector<8x64xf32>
    %393 = vector.shape_cast %385 : vector<8x64xf32> to vector<1x8x64xf32>
    tpu.vector_store %arg14[%390, %c0_110, %c0_111], %393 {strides = array<i32>} : memref<8x8x64xf32, #tpu.memory_space<vmem>>, vector<1x8x64xf32>,
    %c7_i32_112 = arith.constant 7 : i32
    %c7_i32_113 = arith.constant 7 : i32
    %394 = arith.subi %c7_i32_113, %c7_i32_112 : i32
    %395 = arith.truncf %385 : vector<8x64xf32> to vector<8x64xbf16>
    %cst_114 = arith.constant dense<0.000000e+00> : vector<8x256xf32>
    %396 = tpu.matmul %395, %34, %cst_114 {dimension_numbers = #tpu.dot_dimension_numbers<[1], [0], [0], [1], [0, 0, 1, 1], [], []>} : vector<8x64xbf16>, vector<64x256xbf16>, vector<8x256xf32> -> vector<8x256xf32>
    %397 = arith.index_cast %c7_i32_112 : i32 to index
    %c0_115 = arith.constant 0 : index
    %c0_116 = arith.constant 0 : index
    %398 = vector.load %arg12[%397, %c0_115, %c0_116] : memref<8x8x256xf32, #tpu.memory_space<vmem>>, vector<1x8x256xf32>
    %399 = vector.shape_cast %398 : vector<1x8x256xf32> to vector<8x256xf32>
    %400 = arith.index_cast %394 : i32 to index
    %c0_117 = arith.constant 0 : index
    %c0_118 = arith.constant 0 : index
    %401 = vector.load %arg12[%400, %c0_117, %c0_118] : memref<8x8x256xf32, #tpu.memory_space<vmem>>, vector<1x8x256xf32>
    %402 = vector.shape_cast %401 : vector<1x8x256xf32> to vector<8x256xf32>
    %403 = arith.select %23, %399, %402 : vector<8x256xi1>, vector<8x256xf32>
    %404 = vector.broadcast %c7_i32_112 : i32 to vector<8x64xi32>
    %405 = vector.broadcast %394 : i32 to vector<8x64xi32>
    %406 = arith.select %4, %404, %405 : vector<8x64xi1>, vector<8x64xi32>
    %407 = arith.addf %396, %403 : vector<8x256xf32>
    %408 = vector.extract_strided_slice %407 {offsets = [0, 0], sizes = [8, 64], strides = [1, 1]} : vector<8x256xf32> to vector<8x64xf32>
    %409 = arith.negf %408 : vector<8x64xf32>
    %410 = math.exp %409 : vector<8x64xf32>
    %cst_119 = arith.constant 1.000000e+00 : f32
    %411 = vector.broadcast %cst_119 : f32 to vector<8x64xf32>
    %412 = arith.addf %411, %410 : vector<8x64xf32>
    %413 = arith.divf %411, %412 : vector<8x64xf32>
    %414 = vector.extract_strided_slice %407 {offsets = [0, 64], sizes = [8, 64], strides = [1, 1]} : vector<8x256xf32> to vector<8x64xf32>
    %415 = arith.negf %414 : vector<8x64xf32>
    %416 = math.exp %415 : vector<8x64xf32>
    %cst_120 = arith.constant 1.000000e+00 : f32
    %417 = vector.broadcast %cst_120 : f32 to vector<8x64xf32>
    %418 = arith.addf %417, %416 : vector<8x64xf32>
    %419 = arith.divf %417, %418 : vector<8x64xf32>
    %420 = vector.extract_strided_slice %407 {offsets = [0, 128], sizes = [8, 64], strides = [1, 1]} : vector<8x256xf32> to vector<8x64xf32>
    %421 = math.tanh %420 : vector<8x64xf32>
    %422 = vector.extract_strided_slice %407 {offsets = [0, 192], sizes = [8, 64], strides = [1, 1]} : vector<8x256xf32> to vector<8x64xf32>
    %423 = arith.negf %422 : vector<8x64xf32>
    %424 = math.exp %423 : vector<8x64xf32>
    %cst_121 = arith.constant 1.000000e+00 : f32
    %425 = vector.broadcast %cst_121 : f32 to vector<8x64xf32>
    %426 = arith.addf %425, %424 : vector<8x64xf32>
    %427 = arith.divf %425, %426 : vector<8x64xf32>
    %428 = arith.mulf %419, %384 : vector<8x64xf32>
    %429 = arith.mulf %413, %421 : vector<8x64xf32>
    %430 = arith.addf %428, %429 : vector<8x64xf32>
    %431 = math.tanh %430 : vector<8x64xf32>
    %432 = arith.mulf %427, %431 : vector<8x64xf32>
    %433 = vector.broadcast %1 : vector<8x1xi32> to vector<8x64xi32>
    %434 = arith.cmpi sgt, %433, %406 : vector<8x64xi32>
    %435 = arith.select %434, %430, %384 : vector<8x64xi1>, vector<8x64xf32>
    %436 = arith.select %434, %432, %385 : vector<8x64xi1>, vector<8x64xf32>
    %437 = arith.index_cast %c7_i32_112 : i32 to index
    %c0_122 = arith.constant 0 : index
    %c0_123 = arith.constant 0 : index
    %438 = vector.load %arg13[%437, %c0_122, %c0_123] : memref<8x8x64xf32, #tpu.memory_space<vmem>>, vector<1x8x64xf32>
    %439 = vector.shape_cast %438 : vector<1x8x64xf32> to vector<8x64xf32>
    %440 = vector.shape_cast %436 : vector<8x64xf32> to vector<1x8x64xf32>
    tpu.vector_store %arg13[%437, %c0_122, %c0_123], %440 {strides = array<i32>} : memref<8x8x64xf32, #tpu.memory_space<vmem>>, vector<1x8x64xf32>,
    %441 = arith.index_cast %394 : i32 to index
    %c0_124 = arith.constant 0 : index
    %c0_125 = arith.constant 0 : index
    %442 = vector.load %arg14[%441, %c0_124, %c0_125] : memref<8x8x64xf32, #tpu.memory_space<vmem>>, vector<1x8x64xf32>
    %443 = vector.shape_cast %442 : vector<1x8x64xf32> to vector<8x64xf32>
    %444 = vector.shape_cast %436 : vector<8x64xf32> to vector<1x8x64xf32>
    tpu.vector_store %arg14[%441, %c0_124, %c0_125], %444 {strides = array<i32>} : memref<8x8x64xf32, #tpu.memory_space<vmem>>, vector<1x8x64xf32>,
    %c8_i32 = arith.constant 8 : i32
    %c0_126 = arith.constant 0 : index
    %c0_127 = arith.constant 0 : index
    %445 = vector.load %arg6[%c0_126, %c0_127] : memref<1x64xf32, #tpu.memory_space<vmem>>, vector<1x64xf32>
    %c0_128 = arith.constant 0 : index
    %c0_129 = arith.constant 0 : index
    %c0_130 = arith.constant 0 : index
    %446 = vector.load %arg13[%c0_128, %c0_129, %c0_130] : memref<8x8x64xf32, #tpu.memory_space<vmem>>, vector<1x8x64xf32>
    %447 = vector.shape_cast %446 : vector<1x8x64xf32> to vector<8x64xf32>
    %c0_131 = arith.constant 0 : index
    %c0_132 = arith.constant 0 : index
    %c0_133 = arith.constant 0 : index
    %448 = vector.load %arg14[%c0_131, %c0_132, %c0_133] : memref<8x8x64xf32, #tpu.memory_space<vmem>>, vector<1x8x64xf32>
    %449 = vector.shape_cast %448 : vector<1x8x64xf32> to vector<8x64xf32>
    %450 = arith.select %4, %447, %449 : vector<8x64xi1>, vector<8x64xf32>
    %c0_134 = arith.constant 0 : index
    %c0_135 = arith.constant 0 : index
    %c0_136 = arith.constant 0 : index
    %451 = vector.load %arg13[%c0_134, %c0_135, %c0_136] : memref<8x8x64xf32, #tpu.memory_space<vmem>>, vector<1x8x64xf32>
    %452 = vector.shape_cast %451 : vector<1x8x64xf32> to vector<8x64xf32>
    %453 = vector.shape_cast %450 : vector<8x64xf32> to vector<1x8x64xf32>
    tpu.vector_store %arg13[%c0_134, %c0_135, %c0_136], %453 {strides = array<i32>} : memref<8x8x64xf32, #tpu.memory_space<vmem>>, vector<1x8x64xf32>,
    %454 = vector.broadcast %445 : vector<1x64xf32> to vector<8x64xf32>
    %455 = arith.mulf %450, %454 : vector<8x64xf32>
    %cst_137 = arith.constant dense<0.000000e+00> : vector<8xf32>
    %456 = vector.multi_reduction <add>, %455, %cst_137 [1] : vector<8x64xf32> to vector<8xf32>
    %457 = vector.shape_cast %456 : vector<8xf32> to vector<8x1xf32>
    %c1 = arith.constant 1 : index
    %c0_138 = arith.constant 0 : index
    %c0_139 = arith.constant 0 : index
    %458 = vector.load %arg13[%c1, %c0_138, %c0_139] : memref<8x8x64xf32, #tpu.memory_space<vmem>>, vector<1x8x64xf32>
    %459 = vector.shape_cast %458 : vector<1x8x64xf32> to vector<8x64xf32>
    %c1_140 = arith.constant 1 : index
    %c0_141 = arith.constant 0 : index
    %c0_142 = arith.constant 0 : index
    %460 = vector.load %arg14[%c1_140, %c0_141, %c0_142] : memref<8x8x64xf32, #tpu.memory_space<vmem>>, vector<1x8x64xf32>
    %461 = vector.shape_cast %460 : vector<1x8x64xf32> to vector<8x64xf32>
    %462 = arith.select %4, %459, %461 : vector<8x64xi1>, vector<8x64xf32>
    %c1_143 = arith.constant 1 : index
    %c0_144 = arith.constant 0 : index
    %c0_145 = arith.constant 0 : index
    %463 = vector.load %arg13[%c1_143, %c0_144, %c0_145] : memref<8x8x64xf32, #tpu.memory_space<vmem>>, vector<1x8x64xf32>
    %464 = vector.shape_cast %463 : vector<1x8x64xf32> to vector<8x64xf32>
    %465 = vector.shape_cast %462 : vector<8x64xf32> to vector<1x8x64xf32>
    tpu.vector_store %arg13[%c1_143, %c0_144, %c0_145], %465 {strides = array<i32>} : memref<8x8x64xf32, #tpu.memory_space<vmem>>, vector<1x8x64xf32>,
    %466 = vector.broadcast %445 : vector<1x64xf32> to vector<8x64xf32>
    %467 = arith.mulf %462, %466 : vector<8x64xf32>
    %cst_146 = arith.constant dense<0.000000e+00> : vector<8xf32>
    %468 = vector.multi_reduction <add>, %467, %cst_146 [1] : vector<8x64xf32> to vector<8xf32>
    %469 = vector.shape_cast %468 : vector<8xf32> to vector<8x1xf32>
    %c2 = arith.constant 2 : index
    %c0_147 = arith.constant 0 : index
    %c0_148 = arith.constant 0 : index
    %470 = vector.load %arg13[%c2, %c0_147, %c0_148] : memref<8x8x64xf32, #tpu.memory_space<vmem>>, vector<1x8x64xf32>
    %471 = vector.shape_cast %470 : vector<1x8x64xf32> to vector<8x64xf32>
    %c2_149 = arith.constant 2 : index
    %c0_150 = arith.constant 0 : index
    %c0_151 = arith.constant 0 : index
    %472 = vector.load %arg14[%c2_149, %c0_150, %c0_151] : memref<8x8x64xf32, #tpu.memory_space<vmem>>, vector<1x8x64xf32>
    %473 = vector.shape_cast %472 : vector<1x8x64xf32> to vector<8x64xf32>
    %474 = arith.select %4, %471, %473 : vector<8x64xi1>, vector<8x64xf32>
    %c2_152 = arith.constant 2 : index
    %c0_153 = arith.constant 0 : index
    %c0_154 = arith.constant 0 : index
    %475 = vector.load %arg13[%c2_152, %c0_153, %c0_154] : memref<8x8x64xf32, #tpu.memory_space<vmem>>, vector<1x8x64xf32>
    %476 = vector.shape_cast %475 : vector<1x8x64xf32> to vector<8x64xf32>
    %477 = vector.shape_cast %474 : vector<8x64xf32> to vector<1x8x64xf32>
    tpu.vector_store %arg13[%c2_152, %c0_153, %c0_154], %477 {strides = array<i32>} : memref<8x8x64xf32, #tpu.memory_space<vmem>>, vector<1x8x64xf32>,
    %478 = vector.broadcast %445 : vector<1x64xf32> to vector<8x64xf32>
    %479 = arith.mulf %474, %478 : vector<8x64xf32>
    %cst_155 = arith.constant dense<0.000000e+00> : vector<8xf32>
    %480 = vector.multi_reduction <add>, %479, %cst_155 [1] : vector<8x64xf32> to vector<8xf32>
    %481 = vector.shape_cast %480 : vector<8xf32> to vector<8x1xf32>
    %c3 = arith.constant 3 : index
    %c0_156 = arith.constant 0 : index
    %c0_157 = arith.constant 0 : index
    %482 = vector.load %arg13[%c3, %c0_156, %c0_157] : memref<8x8x64xf32, #tpu.memory_space<vmem>>, vector<1x8x64xf32>
    %483 = vector.shape_cast %482 : vector<1x8x64xf32> to vector<8x64xf32>
    %c3_158 = arith.constant 3 : index
    %c0_159 = arith.constant 0 : index
    %c0_160 = arith.constant 0 : index
    %484 = vector.load %arg14[%c3_158, %c0_159, %c0_160] : memref<8x8x64xf32, #tpu.memory_space<vmem>>, vector<1x8x64xf32>
    %485 = vector.shape_cast %484 : vector<1x8x64xf32> to vector<8x64xf32>
    %486 = arith.select %4, %483, %485 : vector<8x64xi1>, vector<8x64xf32>
    %c3_161 = arith.constant 3 : index
    %c0_162 = arith.constant 0 : index
    %c0_163 = arith.constant 0 : index
    %487 = vector.load %arg13[%c3_161, %c0_162, %c0_163] : memref<8x8x64xf32, #tpu.memory_space<vmem>>, vector<1x8x64xf32>
    %488 = vector.shape_cast %487 : vector<1x8x64xf32> to vector<8x64xf32>
    %489 = vector.shape_cast %486 : vector<8x64xf32> to vector<1x8x64xf32>
    tpu.vector_store %arg13[%c3_161, %c0_162, %c0_163], %489 {strides = array<i32>} : memref<8x8x64xf32, #tpu.memory_space<vmem>>, vector<1x8x64xf32>,
    %490 = vector.broadcast %445 : vector<1x64xf32> to vector<8x64xf32>
    %491 = arith.mulf %486, %490 : vector<8x64xf32>
    %cst_164 = arith.constant dense<0.000000e+00> : vector<8xf32>
    %492 = vector.multi_reduction <add>, %491, %cst_164 [1] : vector<8x64xf32> to vector<8xf32>
    %493 = vector.shape_cast %492 : vector<8xf32> to vector<8x1xf32>
    %c4 = arith.constant 4 : index
    %c0_165 = arith.constant 0 : index
    %c0_166 = arith.constant 0 : index
    %494 = vector.load %arg13[%c4, %c0_165, %c0_166] : memref<8x8x64xf32, #tpu.memory_space<vmem>>, vector<1x8x64xf32>
    %495 = vector.shape_cast %494 : vector<1x8x64xf32> to vector<8x64xf32>
    %c4_167 = arith.constant 4 : index
    %c0_168 = arith.constant 0 : index
    %c0_169 = arith.constant 0 : index
    %496 = vector.load %arg14[%c4_167, %c0_168, %c0_169] : memref<8x8x64xf32, #tpu.memory_space<vmem>>, vector<1x8x64xf32>
    %497 = vector.shape_cast %496 : vector<1x8x64xf32> to vector<8x64xf32>
    %498 = arith.select %4, %495, %497 : vector<8x64xi1>, vector<8x64xf32>
    %c4_170 = arith.constant 4 : index
    %c0_171 = arith.constant 0 : index
    %c0_172 = arith.constant 0 : index
    %499 = vector.load %arg13[%c4_170, %c0_171, %c0_172] : memref<8x8x64xf32, #tpu.memory_space<vmem>>, vector<1x8x64xf32>
    %500 = vector.shape_cast %499 : vector<1x8x64xf32> to vector<8x64xf32>
    %501 = vector.shape_cast %498 : vector<8x64xf32> to vector<1x8x64xf32>
    tpu.vector_store %arg13[%c4_170, %c0_171, %c0_172], %501 {strides = array<i32>} : memref<8x8x64xf32, #tpu.memory_space<vmem>>, vector<1x8x64xf32>,
    %502 = vector.broadcast %445 : vector<1x64xf32> to vector<8x64xf32>
    %503 = arith.mulf %498, %502 : vector<8x64xf32>
    %cst_173 = arith.constant dense<0.000000e+00> : vector<8xf32>
    %504 = vector.multi_reduction <add>, %503, %cst_173 [1] : vector<8x64xf32> to vector<8xf32>
    %505 = vector.shape_cast %504 : vector<8xf32> to vector<8x1xf32>
    %c5 = arith.constant 5 : index
    %c0_174 = arith.constant 0 : index
    %c0_175 = arith.constant 0 : index
    %506 = vector.load %arg13[%c5, %c0_174, %c0_175] : memref<8x8x64xf32, #tpu.memory_space<vmem>>, vector<1x8x64xf32>
    %507 = vector.shape_cast %506 : vector<1x8x64xf32> to vector<8x64xf32>
    %c5_176 = arith.constant 5 : index
    %c0_177 = arith.constant 0 : index
    %c0_178 = arith.constant 0 : index
    %508 = vector.load %arg14[%c5_176, %c0_177, %c0_178] : memref<8x8x64xf32, #tpu.memory_space<vmem>>, vector<1x8x64xf32>
    %509 = vector.shape_cast %508 : vector<1x8x64xf32> to vector<8x64xf32>
    %510 = arith.select %4, %507, %509 : vector<8x64xi1>, vector<8x64xf32>
    %c5_179 = arith.constant 5 : index
    %c0_180 = arith.constant 0 : index
    %c0_181 = arith.constant 0 : index
    %511 = vector.load %arg13[%c5_179, %c0_180, %c0_181] : memref<8x8x64xf32, #tpu.memory_space<vmem>>, vector<1x8x64xf32>
    %512 = vector.shape_cast %511 : vector<1x8x64xf32> to vector<8x64xf32>
    %513 = vector.shape_cast %510 : vector<8x64xf32> to vector<1x8x64xf32>
    tpu.vector_store %arg13[%c5_179, %c0_180, %c0_181], %513 {strides = array<i32>} : memref<8x8x64xf32, #tpu.memory_space<vmem>>, vector<1x8x64xf32>,
    %514 = vector.broadcast %445 : vector<1x64xf32> to vector<8x64xf32>
    %515 = arith.mulf %510, %514 : vector<8x64xf32>
    %cst_182 = arith.constant dense<0.000000e+00> : vector<8xf32>
    %516 = vector.multi_reduction <add>, %515, %cst_182 [1] : vector<8x64xf32> to vector<8xf32>
    %517 = vector.shape_cast %516 : vector<8xf32> to vector<8x1xf32>
    %c6 = arith.constant 6 : index
    %c0_183 = arith.constant 0 : index
    %c0_184 = arith.constant 0 : index
    %518 = vector.load %arg13[%c6, %c0_183, %c0_184] : memref<8x8x64xf32, #tpu.memory_space<vmem>>, vector<1x8x64xf32>
    %519 = vector.shape_cast %518 : vector<1x8x64xf32> to vector<8x64xf32>
    %c6_185 = arith.constant 6 : index
    %c0_186 = arith.constant 0 : index
    %c0_187 = arith.constant 0 : index
    %520 = vector.load %arg14[%c6_185, %c0_186, %c0_187] : memref<8x8x64xf32, #tpu.memory_space<vmem>>, vector<1x8x64xf32>
    %521 = vector.shape_cast %520 : vector<1x8x64xf32> to vector<8x64xf32>
    %522 = arith.select %4, %519, %521 : vector<8x64xi1>, vector<8x64xf32>
    %c6_188 = arith.constant 6 : index
    %c0_189 = arith.constant 0 : index
    %c0_190 = arith.constant 0 : index
    %523 = vector.load %arg13[%c6_188, %c0_189, %c0_190] : memref<8x8x64xf32, #tpu.memory_space<vmem>>, vector<1x8x64xf32>
    %524 = vector.shape_cast %523 : vector<1x8x64xf32> to vector<8x64xf32>
    %525 = vector.shape_cast %522 : vector<8x64xf32> to vector<1x8x64xf32>
    tpu.vector_store %arg13[%c6_188, %c0_189, %c0_190], %525 {strides = array<i32>} : memref<8x8x64xf32, #tpu.memory_space<vmem>>, vector<1x8x64xf32>,
    %526 = vector.broadcast %445 : vector<1x64xf32> to vector<8x64xf32>
    %527 = arith.mulf %522, %526 : vector<8x64xf32>
    %cst_191 = arith.constant dense<0.000000e+00> : vector<8xf32>
    %528 = vector.multi_reduction <add>, %527, %cst_191 [1] : vector<8x64xf32> to vector<8xf32>
    %529 = vector.shape_cast %528 : vector<8xf32> to vector<8x1xf32>
    %c7 = arith.constant 7 : index
    %c0_192 = arith.constant 0 : index
    %c0_193 = arith.constant 0 : index
    %530 = vector.load %arg13[%c7, %c0_192, %c0_193] : memref<8x8x64xf32, #tpu.memory_space<vmem>>, vector<1x8x64xf32>
    %531 = vector.shape_cast %530 : vector<1x8x64xf32> to vector<8x64xf32>
    %c7_194 = arith.constant 7 : index
    %c0_195 = arith.constant 0 : index
    %c0_196 = arith.constant 0 : index
    %532 = vector.load %arg14[%c7_194, %c0_195, %c0_196] : memref<8x8x64xf32, #tpu.memory_space<vmem>>, vector<1x8x64xf32>
    %533 = vector.shape_cast %532 : vector<1x8x64xf32> to vector<8x64xf32>
    %534 = arith.select %4, %531, %533 : vector<8x64xi1>, vector<8x64xf32>
    %c7_197 = arith.constant 7 : index
    %c0_198 = arith.constant 0 : index
    %c0_199 = arith.constant 0 : index
    %535 = vector.load %arg13[%c7_197, %c0_198, %c0_199] : memref<8x8x64xf32, #tpu.memory_space<vmem>>, vector<1x8x64xf32>
    %536 = vector.shape_cast %535 : vector<1x8x64xf32> to vector<8x64xf32>
    %537 = vector.shape_cast %534 : vector<8x64xf32> to vector<1x8x64xf32>
    tpu.vector_store %arg13[%c7_197, %c0_198, %c0_199], %537 {strides = array<i32>} : memref<8x8x64xf32, #tpu.memory_space<vmem>>, vector<1x8x64xf32>,
    %538 = vector.broadcast %445 : vector<1x64xf32> to vector<8x64xf32>
    %539 = arith.mulf %534, %538 : vector<8x64xf32>
    %cst_200 = arith.constant dense<0.000000e+00> : vector<8xf32>
    %540 = vector.multi_reduction <add>, %539, %cst_200 [1] : vector<8x64xf32> to vector<8xf32>
    %541 = vector.shape_cast %540 : vector<8xf32> to vector<8x1xf32>
    %542 = tpu.concatenate %457, %469, %481, %493, %505, %517, %529, %541 in 1 : vector<8x1xf32>, vector<8x1xf32>, vector<8x1xf32>, vector<8x1xf32>, vector<8x1xf32>, vector<8x1xf32>, vector<8x1xf32>, vector<8x1xf32> -> vector<8x8xf32>
    %543 = tpu.iota {dimensions = array<i32: 1>} : vector<8x8xi32>
    %544 = vector.broadcast %1 : vector<8x1xi32> to vector<8x8xi32>
    %545 = arith.cmpi slt, %543, %544 : vector<8x8xi32>
    %cst_201 = arith.constant -1.000000e+30 : f32
    %546 = vector.broadcast %cst_201 : f32 to vector<8x8xf32>
    %547 = arith.select %545, %542, %546 : vector<8x8xi1>, vector<8x8xf32>
    %cst_202 = arith.constant dense<0xFF800000> : vector<8xf32>
    %548 = vector.multi_reduction <maximumf>, %547, %cst_202 [1] : vector<8x8xf32> to vector<8xf32>
    %549 = vector.shape_cast %548 : vector<8xf32> to vector<8x1xf32>
    %550 = vector.broadcast %549 : vector<8x1xf32> to vector<8x8xf32>
    %551 = arith.subf %542, %550 : vector<8x8xf32>
    %552 = math.exp %551 : vector<8x8xf32>
    %cst_203 = arith.constant 0.000000e+00 : f32
    %553 = vector.broadcast %cst_203 : f32 to vector<8x8xf32>
    %554 = arith.select %545, %552, %553 : vector<8x8xi1>, vector<8x8xf32>
    %cst_204 = arith.constant dense<0.000000e+00> : vector<8xf32>
    %555 = vector.multi_reduction <add>, %554, %cst_204 [1] : vector<8x8xf32> to vector<8xf32>
    %556 = vector.shape_cast %555 : vector<8xf32> to vector<8x1xf32>
    %cst_205 = arith.constant 0.000000e+00 : f32
    %557 = vector.broadcast %cst_205 : f32 to vector<8x1xf32>
    %558 = arith.cmpf ogt, %556, %557 : vector<8x1xf32>
    %cst_206 = arith.constant 1.000000e+00 : f32
    %559 = vector.broadcast %cst_206 : f32 to vector<8x1xf32>
    %560 = arith.select %558, %556, %559 : vector<8x1xi1>, vector<8x1xf32>
    %561 = vector.broadcast %560 : vector<8x1xf32> to vector<8x8xf32>
    %562 = arith.divf %554, %561 : vector<8x8xf32>
    %c0_207 = arith.constant 0 : index
    %c0_208 = arith.constant 0 : index
    %c0_209 = arith.constant 0 : index
    %563 = vector.load %arg11[%c0_207, %c0_208, %c0_209] : memref<1x8x8xf32, #tpu.memory_space<vmem>>, vector<1x8x8xf32>
    %564 = vector.shape_cast %563 : vector<1x8x8xf32> to vector<8x8xf32>
    %565 = vector.shape_cast %562 : vector<8x8xf32> to vector<1x8x8xf32>
    tpu.vector_store %arg11[%c0_207, %c0_208, %c0_209], %565 {strides = array<i32>} : memref<1x8x8xf32, #tpu.memory_space<vmem>>, vector<1x8x8xf32>,
    %cst_210 = arith.constant 0.000000e+00 : f32
    %566 = vector.broadcast %cst_210 : f32 to vector<8x64xf32>
    %567 = vector.extract_strided_slice %562 {offsets = [0, 0], sizes = [8, 1], strides = [1, 1]} : vector<8x8xf32> to vector<8x1xf32>
    %c0_211 = arith.constant 0 : index
    %c0_212 = arith.constant 0 : index
    %c0_213 = arith.constant 0 : index
    %568 = vector.load %arg13[%c0_211, %c0_212, %c0_213] : memref<8x8x64xf32, #tpu.memory_space<vmem>>, vector<1x8x64xf32>
    %569 = vector.shape_cast %568 : vector<1x8x64xf32> to vector<8x64xf32>
    %570 = vector.broadcast %567 : vector<8x1xf32> to vector<8x64xf32>
    %571 = arith.mulf %570, %569 : vector<8x64xf32>
    %572 = arith.addf %566, %571 : vector<8x64xf32>
    %573 = vector.extract_strided_slice %562 {offsets = [0, 1], sizes = [8, 1], strides = [1, 1]} : vector<8x8xf32> to vector<8x1xf32>
    %c1_214 = arith.constant 1 : index
    %c0_215 = arith.constant 0 : index
    %c0_216 = arith.constant 0 : index
    %574 = vector.load %arg13[%c1_214, %c0_215, %c0_216] : memref<8x8x64xf32, #tpu.memory_space<vmem>>, vector<1x8x64xf32>
    %575 = vector.shape_cast %574 : vector<1x8x64xf32> to vector<8x64xf32>
    %576 = vector.broadcast %573 : vector<8x1xf32> to vector<8x64xf32>
    %577 = arith.mulf %576, %575 : vector<8x64xf32>
    %578 = arith.addf %572, %577 : vector<8x64xf32>
    %579 = vector.extract_strided_slice %562 {offsets = [0, 2], sizes = [8, 1], strides = [1, 1]} : vector<8x8xf32> to vector<8x1xf32>
    %c2_217 = arith.constant 2 : index
    %c0_218 = arith.constant 0 : index
    %c0_219 = arith.constant 0 : index
    %580 = vector.load %arg13[%c2_217, %c0_218, %c0_219] : memref<8x8x64xf32, #tpu.memory_space<vmem>>, vector<1x8x64xf32>
    %581 = vector.shape_cast %580 : vector<1x8x64xf32> to vector<8x64xf32>
    %582 = vector.broadcast %579 : vector<8x1xf32> to vector<8x64xf32>
    %583 = arith.mulf %582, %581 : vector<8x64xf32>
    %584 = arith.addf %578, %583 : vector<8x64xf32>
    %585 = vector.extract_strided_slice %562 {offsets = [0, 3], sizes = [8, 1], strides = [1, 1]} : vector<8x8xf32> to vector<8x1xf32>
    %c3_220 = arith.constant 3 : index
    %c0_221 = arith.constant 0 : index
    %c0_222 = arith.constant 0 : index
    %586 = vector.load %arg13[%c3_220, %c0_221, %c0_222] : memref<8x8x64xf32, #tpu.memory_space<vmem>>, vector<1x8x64xf32>
    %587 = vector.shape_cast %586 : vector<1x8x64xf32> to vector<8x64xf32>
    %588 = vector.broadcast %585 : vector<8x1xf32> to vector<8x64xf32>
    %589 = arith.mulf %588, %587 : vector<8x64xf32>
    %590 = arith.addf %584, %589 : vector<8x64xf32>
    %591 = vector.extract_strided_slice %562 {offsets = [0, 4], sizes = [8, 1], strides = [1, 1]} : vector<8x8xf32> to vector<8x1xf32>
    %c4_223 = arith.constant 4 : index
    %c0_224 = arith.constant 0 : index
    %c0_225 = arith.constant 0 : index
    %592 = vector.load %arg13[%c4_223, %c0_224, %c0_225] : memref<8x8x64xf32, #tpu.memory_space<vmem>>, vector<1x8x64xf32>
    %593 = vector.shape_cast %592 : vector<1x8x64xf32> to vector<8x64xf32>
    %594 = vector.broadcast %591 : vector<8x1xf32> to vector<8x64xf32>
    %595 = arith.mulf %594, %593 : vector<8x64xf32>
    %596 = arith.addf %590, %595 : vector<8x64xf32>
    %597 = vector.extract_strided_slice %562 {offsets = [0, 5], sizes = [8, 1], strides = [1, 1]} : vector<8x8xf32> to vector<8x1xf32>
    %c5_226 = arith.constant 5 : index
    %c0_227 = arith.constant 0 : index
    %c0_228 = arith.constant 0 : index
    %598 = vector.load %arg13[%c5_226, %c0_227, %c0_228] : memref<8x8x64xf32, #tpu.memory_space<vmem>>, vector<1x8x64xf32>
    %599 = vector.shape_cast %598 : vector<1x8x64xf32> to vector<8x64xf32>
    %600 = vector.broadcast %597 : vector<8x1xf32> to vector<8x64xf32>
    %601 = arith.mulf %600, %599 : vector<8x64xf32>
    %602 = arith.addf %596, %601 : vector<8x64xf32>
    %603 = vector.extract_strided_slice %562 {offsets = [0, 6], sizes = [8, 1], strides = [1, 1]} : vector<8x8xf32> to vector<8x1xf32>
    %c6_229 = arith.constant 6 : index
    %c0_230 = arith.constant 0 : index
    %c0_231 = arith.constant 0 : index
    %604 = vector.load %arg13[%c6_229, %c0_230, %c0_231] : memref<8x8x64xf32, #tpu.memory_space<vmem>>, vector<1x8x64xf32>
    %605 = vector.shape_cast %604 : vector<1x8x64xf32> to vector<8x64xf32>
    %606 = vector.broadcast %603 : vector<8x1xf32> to vector<8x64xf32>
    %607 = arith.mulf %606, %605 : vector<8x64xf32>
    %608 = arith.addf %602, %607 : vector<8x64xf32>
    %609 = vector.extract_strided_slice %562 {offsets = [0, 7], sizes = [8, 1], strides = [1, 1]} : vector<8x8xf32> to vector<8x1xf32>
    %c7_232 = arith.constant 7 : index
    %c0_233 = arith.constant 0 : index
    %c0_234 = arith.constant 0 : index
    %610 = vector.load %arg13[%c7_232, %c0_233, %c0_234] : memref<8x8x64xf32, #tpu.memory_space<vmem>>, vector<1x8x64xf32>
    %611 = vector.shape_cast %610 : vector<1x8x64xf32> to vector<8x64xf32>
    %612 = vector.broadcast %609 : vector<8x1xf32> to vector<8x64xf32>
    %613 = arith.mulf %612, %611 : vector<8x64xf32>
    %614 = arith.addf %608, %613 : vector<8x64xf32>
    %c0_235 = arith.constant 0 : index
    %c0_236 = arith.constant 0 : index
    %c0_237 = arith.constant 0 : index
    %615 = vector.load %arg10[%c0_235, %c0_236, %c0_237] : memref<1x8x64xf32, #tpu.memory_space<vmem>>, vector<1x8x64xf32>
    %616 = vector.shape_cast %615 : vector<1x8x64xf32> to vector<8x64xf32>
    %617 = vector.shape_cast %614 : vector<8x64xf32> to vector<1x8x64xf32>
    tpu.vector_store %arg10[%c0_235, %c0_236, %c0_237], %617 {strides = array<i32>} : memref<1x8x64xf32, #tpu.memory_space<vmem>>, vector<1x8x64xf32>,
    %c0_238 = arith.constant 0 : index
    %c0_239 = arith.constant 0 : index
    %618 = vector.load %arg7[%c0_238, %c0_239] : memref<64x4xf32, #tpu.memory_space<vmem>>, vector<64x4xf32>
    %cst_240 = arith.constant dense<0.000000e+00> : vector<8x4xf32>
    %619 = tpu.matmul %614, %618, %cst_240 {dimension_numbers = #tpu.dot_dimension_numbers<[1], [0], [0], [1], [0, 0, 1, 1], [], []>} : vector<8x64xf32>, vector<64x4xf32>, vector<8x4xf32> -> vector<8x4xf32>
    %c0_241 = arith.constant 0 : index
    %c0_242 = arith.constant 0 : index
    %620 = vector.load %arg8[%c0_241, %c0_242] : memref<1x4xf32, #tpu.memory_space<vmem>>, vector<1x4xf32>
    %621 = vector.broadcast %620 : vector<1x4xf32> to vector<8x4xf32>
    %622 = arith.addf %619, %621 : vector<8x4xf32>
    %c0_243 = arith.constant 0 : index
    %c0_244 = arith.constant 0 : index
    %c0_245 = arith.constant 0 : index
    %623 = vector.load %arg9[%c0_243, %c0_244, %c0_245] : memref<1x8x4xf32, #tpu.memory_space<vmem>>, vector<1x8x4xf32>
    %624 = vector.shape_cast %623 : vector<1x8x4xf32> to vector<8x4xf32>
    %625 = vector.shape_cast %622 : vector<8x4xf32> to vector<1x8x4xf32>
    tpu.vector_store %arg9[%c0_243, %c0_244, %c0_245], %625 {strides = array<i32>} : memref<1x8x4xf32, #tpu.memory_space<vmem>>, vector<1x8x4xf32>,
    return
  }
  func.func @transform_0(%arg0: i32) -> (i32, i32, i32) {
    %c0_i32 = arith.constant 0 : i32
    %c0_i32_0 = arith.constant 0 : i32
    %c0_i32_1 = arith.constant 0 : i32
    return %arg0, %c0_i32, %c0_i32_0 : i32, i32, i32
  }
  func.func @transform_1(%arg0: i32) -> (i32, i32, i32) {
    %c0_i32 = arith.constant 0 : i32
    %c0_i32_0 = arith.constant 0 : i32
    %c0_i32_1 = arith.constant 0 : i32
    return %arg0, %c0_i32, %c0_i32_0 : i32, i32, i32
  }
  func.func @transform_2(%arg0: i32) -> (i32, i32) {
    %c0_i32 = arith.constant 0 : i32
    %c0_i32_0 = arith.constant 0 : i32
    %c0_i32_1 = arith.constant 0 : i32
    return %c0_i32, %c0_i32_0 : i32, i32
  }
  func.func @transform_3(%arg0: i32) -> (i32, i32) {
    %c0_i32 = arith.constant 0 : i32
    %c0_i32_0 = arith.constant 0 : i32
    %c0_i32_1 = arith.constant 0 : i32
    return %c0_i32, %c0_i32_0 : i32, i32
  }
  func.func @transform_4(%arg0: i32) -> (i32, i32) {
    %c0_i32 = arith.constant 0 : i32
    %c0_i32_0 = arith.constant 0 : i32
    %c0_i32_1 = arith.constant 0 : i32
    return %c0_i32, %c0_i32_0 : i32, i32
  }
  func.func @transform_5(%arg0: i32) -> (i32, i32) {
    %c0_i32 = arith.constant 0 : i32
    %c0_i32_0 = arith.constant 0 : i32
    %c0_i32_1 = arith.constant 0 : i32
    return %c0_i32, %c0_i32_0 : i32, i32
  }
  func.func @transform_6(%arg0: i32) -> (i32, i32) {
    %c0_i32 = arith.constant 0 : i32
    %c0_i32_0 = arith.constant 0 : i32
    %c0_i32_1 = arith.constant 0 : i32
    return %c0_i32, %c0_i32_0 : i32, i32
  }
  func.func @transform_7(%arg0: i32) -> (i32, i32) {
    %c0_i32 = arith.constant 0 : i32
    %c0_i32_0 = arith.constant 0 : i32
    %c0_i32_1 = arith.constant 0 : i32
    return %c0_i32, %c0_i32_0 : i32, i32
  }
  func.func @transform_8(%arg0: i32) -> (i32, i32, i32) {
    %c0_i32 = arith.constant 0 : i32
    %c0_i32_0 = arith.constant 0 : i32
    %c0_i32_1 = arith.constant 0 : i32
    return %arg0, %c0_i32, %c0_i32_0 : i32, i32, i32
  }
  func.func @transform_9(%arg0: i32) -> (i32, i32, i32) {
    %c0_i32 = arith.constant 0 : i32
    %c0_i32_0 = arith.constant 0 : i32
    %c0_i32_1 = arith.constant 0 : i32
    return %arg0, %c0_i32, %c0_i32_0 : i32, i32, i32
  }
  func.func @transform_10(%arg0: i32) -> (i32, i32, i32) {
    %c0_i32 = arith.constant 0 : i32
    %c0_i32_0 = arith.constant 0 : i32
    %c0_i32_1 = arith.constant 0 : i32
    return %arg0, %c0_i32, %c0_i32_0 : i32, i32, i32
  }
}

</mosaic_0001>

<bundles_post_ra>
// kernel: tpu_custom_call.1
= control target key start
LH: loop header
LB: loop body
LE: loop exit
PB: predicated region body
PF: predicated region fallthrough
CT: control target
= control target key end

     0   :  { %16 = vsyncpa [#allocation6], 0  ;;  %v1527_v2 = vmov 0   ;;  %vm102_vm0 = vcmask 130048   ;;  %s2131_s0 = inlined_call_operand.vmem [shape: s32[1,8,1], index: 0, kind: input, shape index: {}]   ;;  %s2132_s1 = inlined_call_operand.vmem [shape: f32[1,64,16], index: 1, kind: input, shape index: {}]   ;;  %s2133_s2 = inlined_call_operand.vmem [shape: bf16[16,256], index: 2, kind: input, shape index: {}]   ;;  %s2134_s3 = inlined_call_operand.vmem [shape: f32[1,256], index: 3, kind: input, shape index: {}]   ;;  %s2135_s4 = inlined_call_operand.vmem [shape: bf16[64,256], index: 4, kind: input, shape index: {}]   ;;  %s2136_s5 = inlined_call_operand.vmem [shape: f32[1,64], index: 5, kind: input, shape index: {}]   ;;  %s2137_s6 = inlined_call_operand.vmem [shape: f32[64,4], index: 6, kind: input, shape index: {}]   ;;  %s2138_s7 = inlined_call_operand.vmem [shape: f32[1,4], index: 7, kind: input, shape index: {}]   ;;  %s2139_s8 = inlined_call_operand.vmem [shape: f32[1,8,4], index: 8, kind: output, shape index: {0}]   ;;  %s2140_s9 = inlined_call_operand.hbm [shape: f32[1,8,64], index: 9, kind: output, shape index: {1}]   ;;  %s2141_s10 = inlined_call_operand.hbm [shape: f32[1,8,8], index: 10, kind: output, shape index: {2}]  }
   0x1   :  { %v1368_v0 = vld [vmem:[%s2133_s2 + $0x4] ss:$8 sps:$4 sm:$0xff]   ;;  %v1370_v1 = vld [vmem:[%s2133_s2] ss:$8 sps:$4 sm:$0xff]   ;;  %147 = vmatprep.mubr.bf16.mxu0 %v1527_v2  ;;  %296 = vmatprep.mubr.bf16.mxu1 %v1527_v2  ;;  %v1613_v6 = vld [vmem:[%s2135_s4 + $0x34] ss:$8 sps:$4 sm:$0xff]  }
   0x2   :  { %v66_v3 = vld [vmem:[%s2132_s1] sm:$0xff]  ;;  %v67_v4 = vld [vmem:[%s2132_s1 + $0x8] sm:$0xff]  ;;  %129 = vmatprep.subr.bf16.mxu0 %v1368_v0  ;;  %1358 = vset.pattern.permute.xlu0 %v1527_v2  ;;  %v1618_v7 = vld [vmem:[%s2135_s4 + $0x30] ss:$8 sps:$4 sm:$0xff]  }
   0x3   :  { %v74_v5 = vpack.c.bf16 %v67_v4, %v66_v3  ;;  %130 = vmatpush1.bf16.msra.mxu0 %v1370_v1  ;;  %1359 = vset.pattern.permute.xlu1 %v1527_v2  ;;  %v1624_v8 = vld [vmem:[%s2135_s4 + $0x24] ss:$8 sps:$4 sm:$0xff]   ;;  %v68_v9 = vld [vmem:[%s2132_s1 + $0x10] sm:$0xff]  ;;  %v69_v10 = vld [vmem:[%s2132_s1 + $0x18] sm:$0xff] }
   0x4   :  { %272 = vmatprep.subr.bf16.mxu1 %v1613_v6  ;;  %460 = vmatprep.subr.bf16.mxu0 %v1613_v6  ;;  %v1639_v11 = vld [vmem:[%s2135_s4 + $0x20] ss:$8 sps:$4 sm:$0xff]   ;;  %v1646_v12 = vld [vmem:[%s2135_s4 + $0x14] ss:$8 sps:$4 sm:$0xff]  }
   0x5   :  { %273 = vmatpush1.bf16.msra.mxu1 %v1618_v7 }
   0x6   :  { %1279 = vmatmul.mubr.msk.bf16.vlgmr.msra.gmra.mxu0 %vm102_vm0, %v74_v5  ;;  %274 = vmatprep.subr.bf16.mxu1 %v1624_v8 }
   0x7   :  { %157 = vmatprep.mubr.bf16.mxu0 %v1527_v2  ;;  %461 = vmatpush1.bf16.msra.mxu0 %v1618_v7 }
   0x8   :  { %462 = vmatprep.subr.bf16.mxu0 %v1624_v8 }
   0x9   :  { %17 = vsyncpa [#allocation8], 0  ;;  %v75_v13 = vpack.c.bf16 %v69_v10, %v68_v9  ;;  %275 = vmatpush1.bf16.msra.mxu1 %v1639_v11  ;;  %v1654_v14 = vld [vmem:[%s2135_s4 + $0x10] ss:$8 sps:$4 sm:$0xff]   ;;  %v1660_v15 = vld [vmem:[%s2135_s4 + $0x4] ss:$8 sps:$4 sm:$0xff]   ;;  %v36_v23 = vlaneseq }
   0xa   :  { %276 = vmatprep.subr.bf16.mxu1 %v1646_v12  ;;  %v1669_v16 = vld [vmem:[%s2135_s4] ss:$8 sps:$4 sm:$0xff]   ;;  %v72_v20 = vld [vmem:[%s2132_s1 + $0x30] sm:$0xff]  ;;  %v73_v21 = vld [vmem:[%s2132_s1 + $0x38] sm:$0xff]  ;;  %vm260_vm5 = vcmask 523264   ;;  %vm1066_vm13 = vcmask 7168  }
   0xb   :  { %463 = vmatpush1.bf16.msra.mxu0 %v1639_v11  ;;  %v70_v17 = vld [vmem:[%s2132_s1 + $0x20] sm:$0xff]  ;;  %v71_v18 = vld [vmem:[%s2132_s1 + $0x28] sm:$0xff]  ;;  %v77_v22 = vpack.c.bf16 %v73_v21, %v72_v20  ;;  %v83_v24 = vshrl.u32 %v36_v23, 7  ;;  %v1710_v35 = vand.u32 127, %v36_v23  ;;  %vm1068_vm14 = vcmask 15360   ;;  %s1539_s24 = smov [#allocation7]  }
   0xc   :  { %464 = vmatprep.subr.bf16.mxu0 %v1646_v12  ;;  %v76_v19 = vpack.c.bf16 %v71_v18, %v70_v17  ;;  %v80_v26 = vld [vmem:[%s2134_s3] sm:$0x3]  ;;  %s1528_s3 = smov 64   ;;  %vm1070_vm15 = vcmask 23552   ;;  %s1263_s25 = sshll.u32 %s1539_s24, 4  ;;  %s1264_s25 = int_to_ptr.vmem [resolvable:$true] %s1263_s25 }
   0xd   :  { %277 = vmatpush1.bf16.msra.mxu1 %v1654_v14  ;;  %v84_v25 = vsub.s32 0, %v83_v24  ;;  %v88_v28 = vsub.s32 1, %v83_v24  ;;  %v39_v40 = vadd.s32 128, %v1710_v35  ;;  %v44_v43 = vand.u32 63, %v1710_v35 }
   0xe   :  { %1280 = vmatmul.mubr.msk.bf16.gmra.mxu0 %vm102_vm0, %v75_v13  ;;  %278 = vmatprep.subr.bf16.mxu1 %v1660_v15  ;;  %vm38_vm3 = vcmp.lt.s32.totalorder %v1710_v35, 32 }
   0xf   :  { %167 = vmatprep.mubr.bf16.mxu0 %v1527_v2  ;;  %465 = vmatpush1.bf16.msra.mxu0 %v1654_v14  ;;  %v85_v30 = vrot.slane %v80_v26, %v84_v25  ;;  %v89_v32 = vrot.slane %v80_v26, %v88_v28  ;;  %v51_v46 = vand.u32 63, %v39_v40  ;;  %vm1724_vm1 = vcmp.lt.s32.totalorder %v44_v43, 32 }
  0x10   :  { %466 = vmatprep.subr.bf16.mxu0 %v1660_v15 }
  0x11   :  { %279 = vmatpush1.bf16.msra.mxu1 %v1669_v16  ;;  %vm1730_vm2 = vcmp.lt.s32.totalorder %v51_v46, 32 }
  0x12   :  { %365 = vmatprep.subr.bf16.mxu1 %v1613_v6 }
  0x13   :  { %467 = vmatpush1.bf16.msra.mxu0 %v1669_v16 }
  0x14   :  { %297 = vmatmul.mubr.bf16.vlgmr.msra.gmra.mxu1 %v1527_v2  ;;  %648 = vmatprep.subr.bf16.mxu0 %v1613_v6 }
  0x15   :  { %366 = vmatpush1.bf16.msra.mxu1 %v1618_v7  ;;  %389 = vmatprep.mubr.bf16.mxu1 %v1527_v2 }
  0x16   :  { %1281 = vmatmul.mubr.msk.bf16.gmra.mxu0 %vm102_vm0, %v76_v19  ;;  %367 = vmatprep.subr.bf16.mxu1 %v1624_v8 }
  0x17   :  { %177 = vmatprep.mubr.bf16.mxu0 %v1527_v2 }
  0x19   :  { %368 = vmatpush1.bf16.msra.mxu1 %v1639_v11 }
  0x1a   :  { %369 = vmatprep.subr.bf16.mxu1 %v1646_v12 }
  0x1d   :  { %370 = vmatpush1.bf16.msra.mxu1 %v1654_v14 }
  0x1e   :  { %1282 = vmatmul.mubr.msk.bf16.gmra.mxu0 %vm102_vm0, %v77_v22  ;;  %371 = vmatprep.subr.bf16.mxu1 %v1660_v15  ;;  %vm1072_vm0 = vcmask 31744  }
  0x1f   :  { %484 = vmatprep.mubr.bf16.mxu0 %v1527_v2 }
  0x21   :  { %372 = vmatpush1.bf16.msra.mxu1 %v1669_v16 }
  0x22   :  { %555 = vmatprep.subr.bf16.mxu1 %v1613_v6 }
  0xc6   :  { %v149_v27 = vpop.f32.mrf.mxu0 }
  0xc7   :  { %v1784_v22 = vadd.f32 %v149_v27, %v85_v30 }
  0xc8   :  { %v151_v29 = vpop.f32.mrf.mxu0 }
  0xc9   :  { %v1796_v28 = vadd.f32 %v151_v29, %v89_v32 }
  0xca   :  { %v153_v31 = vpop.f32.mrf.mxu0 }
  0xcb   :  { %v1708_v33 = vadd.f32 %v153_v31, %v85_v30 }
  0xcc   :  { %v155_v34 = vpop.f32.mrf.mxu0 }
  0xcd   :  { %v1712_v36 = vadd.f32 %v155_v34, %v89_v32 }
  0xce   :  { %v159_v37 = vpop.f32.mrf.mxu0 }
  0xcf   :  { %v1714_v38 = vadd.f32 %v159_v37, %v85_v30 }
  0xd0   :  { %v161_v39 = vpop.f32.mrf.mxu0 }
  0xd1   :  { %v1717_v41 = vadd.f32 %v161_v39, %v89_v32 }
  0xd2   :  { %v163_v42 = vpop.f32.mrf.mxu0 }
  0xd3   :  { %v1720_v44 = vadd.f32 %v163_v42, %v85_v30 }
  0xd4   :  { %v165_v45 = vpop.f32.mrf.mxu0  ;;  %v298_v48 = vpop.f32.mrf.mxu1 }
  0xd5   :  { %v1722_v47 = vadd.f32 %v165_v45, %v89_v32 }
  0xd6   :  { %v169_v49 = vpop.f32.mrf.mxu0  ;;  %v300_v52 = vpop.f32.mrf.mxu1 }
  0xd7   :  { %v1728_v51 = vadd.f32 %v169_v49, %v85_v30 }
  0xd8   :  { %v171_v53 = vpop.f32.mrf.mxu0  ;;  %v302_v56 = vpop.f32.mrf.mxu1 }
  0xd9   :  { %v1734_v55 = vadd.f32 %v171_v53, %v89_v32  ;;  %v541_v57 = vsel %vm1724_vm1, %v1720_v44, %v1728_v51  ;;  %v634_v58 = vsel %vm1724_vm1, %v1728_v51, %v1720_v44 }
  0xda   :  { %v173_v59 = vpop.f32.mrf.mxu0  ;;  %v303_v61 = vpop.f32.mrf.mxu1 }
  0xdb   :  { %v1744_v60 = vadd.f32 %v173_v59, %v85_v30  ;;  %v542_v62 = vsel %vm1730_vm2, %v1722_v47, %v1734_v55  ;;  %v635_v63 = vsel %vm1730_vm2, %v1734_v55, %v1722_v47 }
  0xdc   :  { %v175_v0 = vpop.f32.mrf.mxu0 }
  0xdd   :  { %v1754_v1 = vadd.f32 %v175_v0, %v89_v32  ;;  %v446_v3 = vsel %vm1724_vm1, %v1714_v38, %v1744_v60  ;;  %v727_v4 = vsel %vm1724_vm1, %v1744_v60, %v1714_v38  ;;  %v1529_v0 = vmov 1  }
  0xde   :  { %v179_v5 = vpop.f32.mrf.mxu0 }
  0xdf   :  { %v1764_v9 = vadd.f32 %v179_v5, %v85_v30  ;;  %v447_v10 = vsel %vm1730_vm2, %v1717_v41, %v1754_v1  ;;  %v728_v13 = vsel %vm1730_vm2, %v1754_v1, %v1717_v41 }
  0xe0   :  { %v181_v17 = vpop.f32.mrf.mxu0 }
  0xe1   :  { %v1774_v18 = vadd.f32 %v181_v17, %v89_v32  ;;  %v351_v19 = vsel %vm1724_vm1, %v1708_v33, %v1764_v9  ;;  %v820_v20 = vsel %vm1724_vm1, %v1764_v9, %v1708_v33 }
  0xe2   :  { %v183_v21 = vpop.f32.mrf.mxu0 }
  0xe3   :  { %v1786_v23 = vadd.f32 %v183_v21, %v85_v30  ;;  %v352_v24 = vsel %vm1730_vm2, %v1712_v36, %v1774_v18  ;;  %v821_v25 = vsel %vm1730_vm2, %v1774_v18, %v1712_v36 }
  0xe4   :  { %v185_v26 = vpop.f32.mrf.mxu0 }
  0xe5   :  { %v217_v27 = vsel %vm1724_vm1, %v1784_v22, %v1786_v23  ;;  %v1802_v30 = vadd.f32 %v185_v26, %v89_v32  ;;  %v913_v31 = vsel %vm1724_vm1, %v1786_v23, %v1784_v22  ;;  %v1314_v22 = vld [vmem:[%s2136_s5] ss:$0 sm:$0xff]  ;;  %vm1074_vm1 = vcmask 39936  }
  0xe6   :  { %v299_v34 = vadd.f32 %v298_v48, %v217_v27  ;;  %v35_v48 = vld [vmem:[%s2131_s0] sm:$0xff]  ;;  %v1530_v27 = vmov 7  }
  0xe7   :  { %v914_v37 = vsel %vm1730_vm2, %v1802_v30, %v1796_v28  ;;  %v218_v39 = vsel %vm1730_vm2, %v1796_v28, %v1802_v30  ;;  %vm1076_vm2 = vcmask 48128  }
  0xe8   :  { %v1291_v29 = vmul.f32 -1.442695, %v299_v34  ;;  %v301_v32 = vadd.f32 %v300_v52, %v218_v39  ;;  %v219_v34 = vsel %vm38_vm3, 0, %v1530_v27 }
  0xea   :  { %1383 = vpow2.f32 %v1291_v29  ;;  %v1292_v49 = vmul.f32 -1.442695, %v301_v32 }
  0xeb   :  { %1385 = vtanh.f32 %v301_v32 }
  0xf7   :  { %v1384_v40 = vpop.eup %1383 }
  0xf8   :  { %v308_v42 = vadd.f32 1.0, %v1384_v40  ;;  %v1386_v43 = vpop.eup %1385 }
  0xfa   :  { %1387 = vrcp.f32 %v308_v42 }
  0xfb   :  { %1389 = vpow2.f32 %v1292_v49 }
 0x107   :  { %v1388_v45 = vpop.eup %1387 }
 0x108   :  { %v319_v46 = vmul.f32 %v1388_v45, %v1386_v43  ;;  %v1390_v53 = vpop.eup %1389  ;;  %v318_v52 = vmul.f32 0.0, %v1388_v45 }
 0x109   :  { %v315_v56 = vadd.f32 1.0, %v1390_v53 }
 0x10a   :  { %321 = vrot.lane.b32.xlu0 %v319_v46, %s1528_s3 }
 0x10b   :  { %1391 = vrcp.f32 %v315_v56 }
 0x10e   :  { %328 = vperm.xlu0 %1358, %v35_v48  }
 0x112   :  { %1360 = vset.pattern.permute.xlu0 %v1529_v0 }
 0x118   :  { %v1392_v5 = vpop.eup %1391 }
 0x17c   :  { %v322_v59 = vpop.permute.xlu0 %321 }
 0x17d   :  { %v324_v61 = vadd.f32 %v322_v59, %v318_v52 }
 0x17f   :  { %1393 = vtanh.f32 %v324_v61 }
 0x189   :  { %v1824_v26 = vpop.permute.xlu0 %328 }
 0x18a   :  { %vm330_vm4 = vcmp.gt.s32.totalorder %v1824_v26, %v219_v34 }
 0x18c   :  { %v1394_v17 = vpop.eup %1393 }
 0x18d   :  { %v326_v21 = vmul.f32 %v1394_v17, %v1392_v5 }
 0x18f   :  { %337 = vrot.lane.b32.xlu1 %v326_v21, %s1528_s3 }
 0x193   :  { %332 = vrot.lane.b32.xlu1 %v324_v61, %s1528_s3 }
 0x201   :  { %v338_v29 = vpop.permute.xlu1 %337 }
 0x202   :  { %v340_v39 = vsel %vm330_vm4, %v338_v29, 0.0 }
 0x203   :  { %341 = vst.msk [vmem:[#allocation3] sm:$0xff] %vm260_vm5, %v340_v39  ;;  %343 = vst.msk [vmem:[#allocation4 + $0x38] sm:$0xff] %vm260_vm5, %v340_v39  ;;  %v344_v32 = vpack.c.bf16 %v340_v39, %v340_v39 }
 0x205   :  { %v333_v40 = vpop.permute.xlu1 %332  ;;  %1293 = vmatmul.mubr.msk.bf16.vlgmr.msra.gmra.mxu1 %vm260_vm5, %v344_v32 }
 0x206   :  { %v335_v42 = vsel %vm330_vm4, %v333_v40, 0.0  ;;  %556 = vmatpush1.bf16.msra.mxu1 %v1618_v7  ;;  %579 = vmatprep.mubr.bf16.mxu1 %v1527_v2  ;;  %vm1082_vm4 = vcmask 64512  }
 0x207   :  { %412 = vrot.lane.b32.xlu1 %v335_v42, %s1528_s3  ;;  %557 = vmatprep.subr.bf16.mxu1 %v1624_v8 }
 0x20a   :  { %558 = vmatpush1.bf16.msra.mxu1 %v1639_v11 }
 0x20b   :  { %559 = vmatprep.subr.bf16.mxu1 %v1646_v12 }
 0x20e   :  { %560 = vmatpush1.bf16.msra.mxu1 %v1654_v14 }
 0x20f   :  { %561 = vmatprep.subr.bf16.mxu1 %v1660_v15 }
 0x212   :  { %562 = vmatpush1.bf16.msra.mxu1 %v1669_v16 }
 0x213   :  { %741 = vmatprep.subr.bf16.mxu1 %v1613_v6 }
 0x279   :  { %v413_v34 = vpop.permute.xlu1 %412 }
 0x2c5   :  { %v391_v43 = vpop.f32.mrf.mxu1 }
 0x2c6   :  { %v392_v45 = vadd.f32 %v391_v43, %v351_v19 }
 0x2c7   :  { %v393_v46 = vpop.f32.mrf.mxu1 }
 0x2c8   :  { %v1294_v48 = vmul.f32 -1.442695, %v392_v45  ;;  %v394_v56 = vadd.f32 %v393_v46, %v352_v24 }
 0x2c9   :  { %v395_v49 = vpop.f32.mrf.mxu1 }
 0x2ca   :  { %1395 = vpow2.f32 %v1294_v48  ;;  %v1295_v19 = vmul.f32 -1.442695, %v394_v56  ;;  %v1531_v48 = vmov 6  }
 0x2cb   :  { %v396_v53 = vpop.f32.mrf.mxu1  ;;  %1397 = vtanh.f32 %v394_v56  ;;  %v353_v49 = vsel %vm38_vm3, 1, %v1531_v48 }
 0x2cc   :  { %vm424_vm6 = vcmp.gt.s32.totalorder %v1824_v26, %v353_v49 }
 0x2d7   :  { %v1396_v52 = vpop.eup %1395 }
 0x2d8   :  { %v401_v59 = vadd.f32 1.0, %v1396_v52  ;;  %v1398_v61 = vpop.eup %1397 }
 0x2da   :  { %1399 = vrcp.f32 %v401_v59 }
 0x2db   :  { %1401 = vpow2.f32 %v1295_v19 }
 0x2e7   :  { %v1400_v5 = vpop.eup %1399 }
 0x2e8   :  { %v416_v17 = vmul.f32 %v1400_v5, %v1398_v61  ;;  %v1402_v21 = vpop.eup %1401  ;;  %v415_v32 = vmul.f32 %v1400_v5, %v413_v34 }
 0x2e9   :  { %v408_v29 = vadd.f32 1.0, %v1402_v21 }
 0x2ea   :  { %418 = vrot.lane.b32.xlu0 %v416_v17, %s1528_s3 }
 0x2eb   :  { %1403 = vrcp.f32 %v408_v29 }
 0x2f8   :  { %v1404_v24 = vpop.eup %1403 }
 0x35c   :  { %v419_v40 = vpop.permute.xlu0 %418 }
 0x35d   :  { %v421_v43 = vadd.f32 %v419_v40, %v415_v32 }
 0x35f   :  { %1405 = vtanh.f32 %v421_v43  ;;  %426 = vrot.lane.b32.xlu0 %v421_v43, %s1528_s3 }
 0x36c   :  { %v1406_v45 = vpop.eup %1405 }
 0x36d   :  { %v423_v46 = vmul.f32 %v1406_v45, %v1404_v24 }
 0x36f   :  { %431 = vrot.lane.b32.xlu1 %v423_v46, %s1528_s3 }
 0x3d1   :  { %v427_v53 = vpop.permute.xlu0 %426 }
 0x3d2   :  { %v429_v56 = vsel %vm424_vm6, %v427_v53, %v335_v42 }
 0x3d3   :  { %507 = vrot.lane.b32.xlu1 %v429_v56, %s1528_s3 }
 0x3e1   :  { %v432_v52 = vpop.permute.xlu1 %431 }
 0x3e2   :  { %v434_v59 = vsel %vm424_vm6, %v432_v52, %v340_v39  ;;  %vm1080_vm6 = vcmp.lt.s32.totalorder %v1710_v35, %v1824_v26  ;;  %v1163_v35 = vld [vmem:[%s2137_s6 + $0x38] sm:$0xff] }
 0x3e3   :  { %436 = vst.msk [vmem:[#allocation3 + $0x8] sm:$0xff] %vm260_vm5, %v434_v59  ;;  %438 = vst.msk [vmem:[#allocation4 + $0x30] sm:$0xff] %vm260_vm5, %v434_v59  ;;  %v439_v61 = vpack.c.bf16 %v434_v59, %v434_v59 }
 0x3e5   :  { %1296 = vmatmul.mubr.msk.bf16.vlgmr.msra.gmra.mxu0 %vm260_vm5, %v439_v61 }
 0x3e6   :  { %649 = vmatpush1.bf16.msra.mxu0 %v1618_v7  ;;  %672 = vmatprep.mubr.bf16.mxu0 %v1527_v2 }
 0x3e7   :  { %650 = vmatprep.subr.bf16.mxu0 %v1624_v8 }
 0x3ea   :  { %651 = vmatpush1.bf16.msra.mxu0 %v1639_v11 }
 0x3eb   :  { %652 = vmatprep.subr.bf16.mxu0 %v1646_v12 }
 0x3ee   :  { %653 = vmatpush1.bf16.msra.mxu0 %v1654_v14 }
 0x3ef   :  { %654 = vmatprep.subr.bf16.mxu0 %v1660_v15 }
 0x3f2   :  { %655 = vmatpush1.bf16.msra.mxu0 %v1669_v16 }
 0x3f3   :  { %834 = vmatprep.subr.bf16.mxu0 %v1613_v6 }
 0x445   :  { %v508_v46 = vpop.permute.xlu1 %507 }
 0x4a5   :  { %v486_v39 = vpop.f32.mrf.mxu0 }
 0x4a6   :  { %v487_v42 = vadd.f32 %v486_v39, %v446_v3 }
 0x4a7   :  { %v488_v5 = vpop.f32.mrf.mxu0 }
 0x4a8   :  { %v1297_v17 = vmul.f32 -1.442695, %v487_v42  ;;  %v489_v34 = vadd.f32 %v488_v5, %v447_v10  ;;  %v1532_v5 = vmov 5  }
 0x4a9   :  { %v490_v19 = vpop.f32.mrf.mxu0 }
 0x4aa   :  { %1407 = vpow2.f32 %v1297_v17  ;;  %v1298_v3 = vmul.f32 -1.442695, %v489_v34  ;;  %v448_v17 = vsel %vm38_vm3, 2, %v1532_v5 }
 0x4ab   :  { %v491_v21 = vpop.f32.mrf.mxu0  ;;  %1409 = vtanh.f32 %v489_v34  ;;  %vm519_vm7 = vcmp.gt.s32.totalorder %v1824_v26, %v448_v17 }
 0x4b7   :  { %v1408_v29 = vpop.eup %1407 }
 0x4b8   :  { %v496_v32 = vadd.f32 1.0, %v1408_v29  ;;  %v1410_v40 = vpop.eup %1409 }
 0x4ba   :  { %1411 = vrcp.f32 %v496_v32 }
 0x4bb   :  { %1413 = vpow2.f32 %v1298_v3 }
 0x4c7   :  { %v1412_v43 = vpop.eup %1411 }
 0x4c8   :  { %v511_v24 = vmul.f32 %v1412_v43, %v1410_v40  ;;  %v1414_v45 = vpop.eup %1413  ;;  %v510_v53 = vmul.f32 %v1412_v43, %v508_v46 }
 0x4c9   :  { %v503_v49 = vadd.f32 1.0, %v1414_v45 }
 0x4ca   :  { %513 = vrot.lane.b32.xlu0 %v511_v24, %s1528_s3 }
 0x4cb   :  { %1415 = vrcp.f32 %v503_v49 }
 0x4d8   :  { %v1416_v10 = vpop.eup %1415 }
 0x53c   :  { %v514_v52 = vpop.permute.xlu0 %513 }
 0x53d   :  { %v516_v61 = vadd.f32 %v514_v52, %v510_v53 }
 0x53f   :  { %1417 = vtanh.f32 %v516_v61  ;;  %521 = vrot.lane.b32.xlu0 %v516_v61, %s1528_s3 }
 0x54c   :  { %v1418_v39 = vpop.eup %1417 }
 0x54d   :  { %v518_v42 = vmul.f32 %v1418_v39, %v1416_v10 }
 0x54f   :  { %526 = vrot.lane.b32.xlu1 %v518_v42, %s1528_s3 }
 0x5b1   :  { %v522_v19 = vpop.permute.xlu0 %521 }
 0x5b2   :  { %v524_v21 = vsel %vm519_vm7, %v522_v19, %v429_v56 }
 0x5b3   :  { %602 = vrot.lane.b32.xlu1 %v524_v21, %s1528_s3 }
 0x5c1   :  { %v527_v34 = vpop.permute.xlu1 %526 }
 0x5c2   :  { %v529_v29 = vsel %vm519_vm7, %v527_v34, %v434_v59 }
 0x5c3   :  { %531 = vst.msk [vmem:[#allocation3 + $0x10] sm:$0xff] %vm260_vm5, %v529_v29  ;;  %533 = vst.msk [vmem:[#allocation4 + $0x28] sm:$0xff] %vm260_vm5, %v529_v29  ;;  %v534_v32 = vpack.c.bf16 %v529_v29, %v529_v29 }
 0x5c5   :  { %1299 = vmatmul.mubr.msk.bf16.vlgmr.msra.gmra.mxu1 %vm260_vm5, %v534_v32 }
 0x5c6   :  { %742 = vmatpush1.bf16.msra.mxu1 %v1618_v7  ;;  %765 = vmatprep.mubr.bf16.mxu1 %v1527_v2 }
 0x5c7   :  { %743 = vmatprep.subr.bf16.mxu1 %v1624_v8 }
 0x5ca   :  { %744 = vmatpush1.bf16.msra.mxu1 %v1639_v11 }
 0x5cb   :  { %745 = vmatprep.subr.bf16.mxu1 %v1646_v12 }
 0x5ce   :  { %746 = vmatpush1.bf16.msra.mxu1 %v1654_v14 }
 0x5cf   :  { %747 = vmatprep.subr.bf16.mxu1 %v1660_v15 }
 0x5d2   :  { %748 = vmatpush1.bf16.msra.mxu1 %v1669_v16 }
 0x5d3   :  { %927 = vmatprep.subr.bf16.mxu1 %v1613_v6 }
 0x625   :  { %v603_v10 = vpop.permute.xlu1 %602 }
 0x685   :  { %v581_v56 = vpop.f32.mrf.mxu1 }
 0x686   :  { %v582_v59 = vadd.f32 %v581_v56, %v541_v57  ;;  %v1533_v56 = vmov 4  }
 0x687   :  { %v583_v40 = vpop.f32.mrf.mxu1 }
 0x688   :  { %v1300_v43 = vmul.f32 -1.442695, %v582_v59  ;;  %v584_v45 = vadd.f32 %v583_v40, %v542_v62  ;;  %v543_v59 = vsel %vm38_vm3, 3, %v1533_v56 }
 0x689   :  { %v585_v24 = vpop.f32.mrf.mxu1  ;;  %vm614_vm8 = vcmp.gt.s32.totalorder %v1824_v26, %v543_v59 }
 0x68a   :  { %1419 = vpow2.f32 %v1300_v43  ;;  %v1301_v57 = vmul.f32 -1.442695, %v584_v45 }
 0x68b   :  { %v586_v3 = vpop.f32.mrf.mxu1  ;;  %1421 = vtanh.f32 %v584_v45 }
 0x697   :  { %v1420_v46 = vpop.eup %1419 }
 0x698   :  { %v591_v6 = vadd.f32 1.0, %v1420_v46  ;;  %v1422_v49 = vpop.eup %1421 }
 0x69a   :  { %1423 = vrcp.f32 %v591_v6 }
 0x69b   :  { %1425 = vpow2.f32 %v1301_v57 }
 0x6a7   :  { %v1424_v53 = vpop.eup %1423 }
 0x6a8   :  { %v606_v52 = vmul.f32 %v1424_v53, %v1422_v49  ;;  %v1426_v61 = vpop.eup %1425  ;;  %v605_v42 = vmul.f32 %v1424_v53, %v603_v10 }
 0x6a9   :  { %v598_v39 = vadd.f32 1.0, %v1426_v61 }
 0x6aa   :  { %608 = vrot.lane.b32.xlu0 %v606_v52, %s1528_s3 }
 0x6ab   :  { %1427 = vrcp.f32 %v598_v39 }
 0x6b8   :  { %v1428_v62 = vpop.eup %1427 }
 0x71c   :  { %v609_v17 = vpop.permute.xlu0 %608 }
 0x71d   :  { %v611_v19 = vadd.f32 %v609_v17, %v605_v42 }
 0x71f   :  { %1429 = vtanh.f32 %v611_v19  ;;  %616 = vrot.lane.b32.xlu0 %v611_v19, %s1528_s3 }
 0x72c   :  { %v1430_v34 = vpop.eup %1429 }
 0x72d   :  { %v613_v32 = vmul.f32 %v1430_v34, %v1428_v62 }
 0x72f   :  { %621 = vrot.lane.b32.xlu1 %v613_v32, %s1528_s3  ;;  %v1534_v32 = vmov 3  }
 0x730   :  { %v636_v59 = vsel %vm38_vm3, 4, %v1534_v32 }
 0x731   :  { %vm707_vm9 = vcmp.gt.s32.totalorder %v1824_v26, %v636_v59  ;;  %v1018_v59 = vld [vmem:[#allocation3 + $0x10] sm:$0xff] }
 0x791   :  { %v617_v40 = vpop.permute.xlu0 %616 }
 0x792   :  { %v619_v43 = vsel %vm614_vm8, %v617_v40, %v524_v21 }
 0x793   :  { %695 = vrot.lane.b32.xlu1 %v619_v43, %s1528_s3 }
 0x7a1   :  { %v622_v24 = vpop.permute.xlu1 %621 }
 0x7a2   :  { %v624_v3 = vsel %vm614_vm8, %v622_v24, %v529_v29  ;;  %vm1537_vm8 = vmmov 0  }
 0x7a3   :  { %626 = vst.msk [vmem:[#allocation3 + $0x18] sm:$0xff] %vm260_vm5, %v624_v3  ;;  %628 = vst.msk [vmem:[#allocation4 + $0x20] sm:$0xff] %vm260_vm5, %v624_v3  ;;  %v629_v45 = vpack.c.bf16 %v624_v3, %v624_v3 }
 0x7a5   :  { %1302 = vmatmul.mubr.msk.bf16.vlgmr.msra.gmra.mxu0 %vm260_vm5, %v629_v45 }
 0x7a6   :  { %835 = vmatpush1.bf16.msra.mxu0 %v1618_v7  ;;  %858 = vmatprep.mubr.bf16.mxu0 %v1527_v2 }
 0x7a7   :  { %836 = vmatprep.subr.bf16.mxu0 %v1624_v8 }
 0x7aa   :  { %837 = vmatpush1.bf16.msra.mxu0 %v1639_v11 }
 0x7ab   :  { %838 = vmatprep.subr.bf16.mxu0 %v1646_v12 }
 0x7ae   :  { %839 = vmatpush1.bf16.msra.mxu0 %v1654_v14 }
 0x7af   :  { %840 = vmatprep.subr.bf16.mxu0 %v1660_v15 }
 0x7b2   :  { %841 = vmatpush1.bf16.msra.mxu0 %v1669_v16 }
 0x865   :  { %v674_v21 = vpop.f32.mrf.mxu0 }
 0x866   :  { %v675_v29 = vadd.f32 %v674_v21, %v634_v58  ;;  %v696_v58 = vpop.permute.xlu1 %695 }
 0x867   :  { %v676_v46 = vpop.f32.mrf.mxu0 }
 0x868   :  { %v1303_v6 = vmul.f32 -1.442695, %v675_v29  ;;  %v677_v52 = vadd.f32 %v676_v46, %v635_v63  ;;  %v1026_v46 = vld [vmem:[#allocation3 + $0x18] sm:$0xff] }
 0x869   :  { %v678_v49 = vpop.f32.mrf.mxu0 }
 0x86a   :  { %1431 = vpow2.f32 %v1303_v6  ;;  %v1304_v44 = vmul.f32 -1.442695, %v677_v52  ;;  %v1035_v49 = vld [vmem:[#allocation4 + $0x20] sm:$0xff] }
 0x86b   :  { %v679_v53 = vpop.f32.mrf.mxu0  ;;  %1433 = vtanh.f32 %v677_v52 }
 0x877   :  { %v1432_v57 = vpop.eup %1431 }
 0x878   :  { %v684_v61 = vadd.f32 1.0, %v1432_v57  ;;  %v1434_v10 = vpop.eup %1433 }
 0x87a   :  { %1435 = vrcp.f32 %v684_v61 }
 0x87b   :  { %1437 = vpow2.f32 %v1304_v44 }
 0x887   :  { %v1436_v39 = vpop.eup %1435 }
 0x888   :  { %v699_v42 = vmul.f32 %v1436_v39, %v1434_v10  ;;  %v1438_v51 = vpop.eup %1437  ;;  %v698_v19 = vmul.f32 %v1436_v39, %v696_v58 }
 0x889   :  { %v691_v17 = vadd.f32 1.0, %v1438_v51 }
 0x88a   :  { %701 = vrot.lane.b32.xlu0 %v699_v42, %s1528_s3 }
 0x88b   :  { %1439 = vrcp.f32 %v691_v17  ;;  %v1535_v17 = vmov 2  }
 0x898   :  { %v1440_v47 = vpop.eup %1439 }
 0x8fc   :  { %v702_v62 = vpop.permute.xlu0 %701 }
 0x8fd   :  { %v704_v34 = vadd.f32 %v702_v62, %v698_v19  ;;  %v729_v19 = vsel %vm38_vm3, 5, %v1535_v17 }
 0x8fe   :  { %vm800_vm10 = vcmp.gt.s32.totalorder %v1824_v26, %v729_v19 }
 0x8ff   :  { %1441 = vtanh.f32 %v704_v34  ;;  %709 = vrot.lane.b32.xlu0 %v704_v34, %s1528_s3 }
 0x90c   :  { %v1442_v55 = vpop.eup %1441 }
 0x90d   :  { %v706_v63 = vmul.f32 %v1442_v55, %v1440_v47 }
 0x90f   :  { %714 = vrot.lane.b32.xlu1 %v706_v63, %s1528_s3 }
 0x971   :  { %v710_v40 = vpop.permute.xlu0 %709 }
 0x972   :  { %v712_v24 = vsel %vm707_vm9, %v710_v40, %v619_v43 }
 0x973   :  { %788 = vrot.lane.b32.xlu1 %v712_v24, %s1528_s3 }
 0x981   :  { %v715_v45 = vpop.permute.xlu1 %714 }
 0x982   :  { %v717_v21 = vsel %vm707_vm9, %v715_v45, %v624_v3 }
 0x983   :  { %719 = vst.msk [vmem:[#allocation3 + $0x20] sm:$0xff] %vm260_vm5, %v717_v21  ;;  %721 = vst.msk [vmem:[#allocation4 + $0x18] sm:$0xff] %vm260_vm5, %v717_v21  ;;  %v722_v29 = vpack.c.bf16 %v717_v21, %v717_v21 }
 0x985   :  { %1305 = vmatmul.mubr.msk.bf16.vlgmr.msra.gmra.mxu1 %vm260_vm5, %v722_v29  ;;  %v1043_v29 = vld [vmem:[#allocation4 + $0x28] sm:$0xff] }
 0x986   :  { %928 = vmatpush1.bf16.msra.mxu1 %v1618_v7  ;;  %951 = vmatprep.mubr.bf16.mxu1 %v1527_v2 }
 0x987   :  { %929 = vmatprep.subr.bf16.mxu1 %v1624_v8 }
 0x98a   :  { %930 = vmatpush1.bf16.msra.mxu1 %v1639_v11  ;;  %v1027_v43 = vld [vmem:[#allocation4 + $0x18] sm:$0xff]  ;;  %v1034_v6 = vld [vmem:[#allocation3 + $0x20] sm:$0xff] }
 0x98b   :  { %931 = vmatprep.subr.bf16.mxu1 %v1646_v12  ;;  %v1960_v3 = vsel %vm38_vm3, %v1026_v46, %v1027_v43  ;;  %v1964_v53 = vsel %vm38_vm3, %v1034_v6, %v1035_v49 }
 0x98c   :  { %1029 = vst.msk [vmem:[#allocation3 + $0x18] sm:$0xff] %vm260_vm5, %v1960_v3  ;;  %1037 = vst.msk [vmem:[#allocation3 + $0x20] sm:$0xff] %vm260_vm5, %v1964_v53  ;;  %v1030_v28 = vmul.f32 %v1314_v22, %v1960_v3 }
 0x98e   :  { %932 = vmatpush1.bf16.msra.mxu1 %v1654_v14  ;;  %v1031_v30 = vsel %vm260_vm5, %v1030_v28, 0.0 }
 0x98f   :  { %933 = vmatprep.subr.bf16.mxu1 %v1660_v15 }
 0x992   :  { %934 = vmatpush1.bf16.msra.mxu1 %v1669_v16 }
 0xa45   :  { %v767_v7 = vpop.f32.mrf.mxu1 }
 0xa46   :  { %v768_v8 = vadd.f32 %v767_v7, %v727_v4  ;;  %v789_v4 = vpop.permute.xlu1 %788 }
 0xa47   :  { %v769_v11 = vpop.f32.mrf.mxu1 }
 0xa48   :  { %v1306_v12 = vmul.f32 -1.442695, %v768_v8  ;;  %v770_v14 = vadd.f32 %v769_v11, %v728_v13 }
 0xa49   :  { %v771_v52 = vpop.f32.mrf.mxu1 }
 0xa4a   :  { %1443 = vpow2.f32 %v1306_v12  ;;  %v1307_v38 = vmul.f32 -1.442695, %v770_v14 }
 0xa4b   :  { %v772_v57 = vpop.f32.mrf.mxu1  ;;  %1445 = vtanh.f32 %v770_v14 }
 0xa57   :  { %v1444_v15 = vpop.eup %1443 }
 0xa58   :  { %v777_v16 = vadd.f32 1.0, %v1444_v15  ;;  %v1446_v61 = vpop.eup %1445 }
 0xa5a   :  { %1447 = vrcp.f32 %v777_v16 }
 0xa5b   :  { %1449 = vpow2.f32 %v1307_v38  ;;  %v822_v38 = vsel %vm38_vm3, 6, %v1529_v0  ;;  %v1010_v0 = vld [vmem:[#allocation3 + $0x8] sm:$0xff] }
 0xa5c   :  { %vm893_vm11 = vcmp.gt.s32.totalorder %v1824_v26, %v822_v38 }
 0xa67   :  { %v1448_v10 = vpop.eup %1447 }
 0xa68   :  { %v792_v39 = vmul.f32 %v1448_v10, %v1446_v61  ;;  %v1450_v60 = vpop.eup %1449  ;;  %v791_v44 = vmul.f32 %v1448_v10, %v789_v4 }
 0xa69   :  { %v784_v42 = vadd.f32 1.0, %v1450_v60 }
 0xa6a   :  { %794 = vrot.lane.b32.xlu0 %v792_v39, %s1528_s3 }
 0xa6b   :  { %1451 = vrcp.f32 %v784_v42 }
 0xa78   :  { %v1452_v41 = vpop.eup %1451 }
 0xadc   :  { %v795_v51 = vpop.permute.xlu0 %794 }
 0xadd   :  { %v797_v58 = vadd.f32 %v795_v51, %v791_v44 }
 0xadf   :  { %1453 = vtanh.f32 %v797_v58  ;;  %802 = vrot.lane.b32.xlu0 %v797_v58, %s1528_s3 }
 0xaec   :  { %v1454_v1 = vpop.eup %1453 }
 0xaed   :  { %v799_v13 = vmul.f32 %v1454_v1, %v1452_v41  ;;  %v1051_v1 = vld [vmem:[#allocation4 + $0x30] sm:$0xff] }
 0xaef   :  { %807 = vrot.lane.b32.xlu1 %v799_v13, %s1528_s3 }
 0xb51   :  { %v803_v62 = vpop.permute.xlu0 %802 }
 0xb52   :  { %v805_v34 = vsel %vm800_vm10, %v803_v62, %v712_v24 }
 0xb53   :  { %881 = vrot.lane.b32.xlu1 %v805_v34, %s1528_s3 }
 0xb61   :  { %v808_v47 = vpop.permute.xlu1 %807 }
 0xb62   :  { %v810_v55 = vsel %vm800_vm10, %v808_v47, %v717_v21 }
 0xb63   :  { %812 = vst.msk [vmem:[#allocation3 + $0x28] sm:$0xff] %vm260_vm5, %v810_v55  ;;  %814 = vst.msk [vmem:[#allocation4 + $0x10] sm:$0xff] %vm260_vm5, %v810_v55  ;;  %v815_v63 = vpack.c.bf16 %v810_v55, %v810_v55 }
 0xb65   :  { %1308 = vmatmul.mubr.msk.bf16.vlgmr.msra.gmra.mxu0 %vm260_vm5, %v815_v63 }
 0xb6a   :  { %v1019_v40 = vld [vmem:[#allocation4 + $0x10] sm:$0xff]  ;;  %v1042_v45 = vld [vmem:[#allocation3 + $0x28] sm:$0xff] }
 0xb6b   :  { %v1996_v46 = vsel %vm38_vm3, %v1018_v59, %v1019_v40  ;;  %v2000_v24 = vsel %vm38_vm3, %v1042_v45, %v1043_v29 }
 0xb6c   :  { %1021 = vst.msk [vmem:[#allocation3 + $0x10] sm:$0xff] %vm260_vm5, %v1996_v46  ;;  %1045 = vst.msk [vmem:[#allocation3 + $0x28] sm:$0xff] %vm260_vm5, %v2000_v24  ;;  %v1022_v23 = vmul.f32 %v1314_v22, %v1996_v46 }
 0xb6e   :  { %v1023_v54 = vsel %vm260_vm5, %v1022_v23, 0.0 }
 0xc25   :  { %v860_v21 = vpop.f32.mrf.mxu0 }
 0xc26   :  { %v861_v43 = vadd.f32 %v860_v21, %v820_v20  ;;  %v882_v20 = vpop.permute.xlu1 %881 }
 0xc27   :  { %v862_v6 = vpop.f32.mrf.mxu0 }
 0xc28   :  { %v1309_v49 = vmul.f32 -1.442695, %v861_v43  ;;  %v863_v11 = vadd.f32 %v862_v6, %v821_v25 }
 0xc29   :  { %v864_v7 = vpop.f32.mrf.mxu0 }
 0xc2a   :  { %1455 = vpow2.f32 %v1309_v49  ;;  %v1310_v33 = vmul.f32 -1.442695, %v863_v11 }
 0xc2b   :  { %v865_v8 = vpop.f32.mrf.mxu0  ;;  %1457 = vtanh.f32 %v863_v11 }
 0xc37   :  { %v1456_v12 = vpop.eup %1455 }
 0xc38   :  { %v870_v52 = vadd.f32 1.0, %v1456_v12  ;;  %v1458_v57 = vpop.eup %1457 }
 0xc3a   :  { %1459 = vrcp.f32 %v870_v52 }
 0xc3b   :  { %1461 = vpow2.f32 %v1310_v33 }
 0xc47   :  { %v1460_v14 = vpop.eup %1459 }
 0xc48   :  { %v885_v15 = vmul.f32 %v1460_v14, %v1458_v57  ;;  %v1462_v9 = vpop.eup %1461  ;;  %v884_v61 = vmul.f32 %v1460_v14, %v882_v20  ;;  %v1038_v14 = vmul.f32 %v1314_v22, %v1964_v53  ;;  %v915_v20 = vsel %vm38_vm3, 7, %v1527_v2  ;;  %v996_v53 = vld [vmem:[#allocation3] sm:$0xff] }
 0xc49   :  { %v877_v16 = vadd.f32 1.0, %v1462_v9  ;;  %vm986_vm12 = vcmp.gt.s32.totalorder %v1824_v26, %v915_v20  ;;  %v1536_v26 = vmov 0.0  }
 0xc4a   :  { %887 = vrot.lane.b32.xlu0 %v885_v15, %s1528_s3  ;;  %v1039_v15 = vsel %vm260_vm5, %v1038_v14, 0.0  ;;  %1326 = vmatprep.subr.mxu0 %v1536_v26 }
 0xc4b   :  { %1463 = vrcp.f32 %v877_v16  ;;  %1327 = vmatpush3.msra.mxu0 %v1163_v35  ;;  %1342 = vmatprep.mubr.msk.f32.mxu0 %vm1537_vm8, %v1536_v26 }
 0xc4c   :  { %1328 = vmatprep.subr.mxu0 %v1536_v26 }
 0xc58   :  { %v1464_v36 = vpop.eup %1463 }
 0xcbc   :  { %v888_v10 = vpop.permute.xlu0 %887 }
 0xcbd   :  { %v890_v39 = vadd.f32 %v888_v10, %v884_v61 }
 0xcbf   :  { %1465 = vtanh.f32 %v890_v39  ;;  %895 = vrot.lane.b32.xlu0 %v890_v39, %s1528_s3 }
 0xccc   :  { %v1466_v18 = vpop.eup %1465 }
 0xccd   :  { %v892_v25 = vmul.f32 %v1466_v18, %v1464_v36  ;;  %v1059_v36 = vld [vmem:[#allocation4 + $0x38] sm:$0xff] }
 0xccf   :  { %900 = vrot.lane.b32.xlu1 %v892_v25, %s1528_s3 }
 0xd31   :  { %v896_v60 = vpop.permute.xlu0 %895 }
 0xd32   :  { %v898_v4 = vsel %vm893_vm11, %v896_v60, %v805_v34  ;;  %v1046_v60 = vmul.f32 %v1314_v22, %v2000_v24 }
 0xd33   :  { %974 = vrot.lane.b32.xlu1 %v898_v4, %s1528_s3 }
 0xd34   :  { %v1047_v4 = vsel %vm260_vm5, %v1046_v60, 0.0 }
 0xd41   :  { %v901_v42 = vpop.permute.xlu1 %900 }
 0xd42   :  { %v2024_v44 = vsel %vm893_vm11, %v901_v42, %v810_v55 }
 0xd43   :  { %905 = vst.msk [vmem:[#allocation3 + $0x30] sm:$0xff] %vm260_vm5, %v2024_v44  ;;  %907 = vst.msk [vmem:[#allocation4 + $0x8] sm:$0xff] %vm260_vm5, %v2024_v44  ;;  %v908_v51 = vpack.c.bf16 %v2024_v44, %v2024_v44 }
 0xd45   :  { %1311 = vmatmul.mubr.msk.bf16.vlgmr.msra.gmra.mxu1 %vm260_vm5, %v908_v51 }
 0xd4a   :  { %v1011_v58 = vld [vmem:[#allocation4 + $0x8] sm:$0xff]  ;;  %v1050_v41 = vld [vmem:[#allocation3 + $0x30] sm:$0xff] }
 0xd4b   :  { %v1012_v13 = vsel %vm38_vm3, %v1010_v0, %v1011_v58  ;;  %v1052_v19 = vsel %vm38_vm3, %v1050_v41, %v1051_v1 }
 0xd4c   :  { %1013 = vst.msk [vmem:[#allocation3 + $0x8] sm:$0xff] %vm260_vm5, %v1012_v13  ;;  %1053 = vst.msk [vmem:[#allocation3 + $0x30] sm:$0xff] %vm260_vm5, %v1052_v19  ;;  %v1014_v3 = vmul.f32 %v1314_v22, %v1012_v13  ;;  %v1054_v33 = vmul.f32 %v1314_v22, %v1052_v19 }
 0xd4e   :  { %v1015_v57 = vsel %vm260_vm5, %v1014_v3, 0.0  ;;  %v1055_v9 = vsel %vm260_vm5, %v1054_v33, 0.0  ;;  %v1120_v33 = vld [vmem:[#allocation3 + $0x18] sm:$0xff] }
 0xda5   :  { %v975_v6 = vpop.permute.xlu1 %974 }
 0xe05   :  { %v953_v62 = vpop.f32.mrf.mxu1 }
 0xe06   :  { %v954_v34 = vadd.f32 %v953_v62, %v913_v31 }
 0xe07   :  { %v955_v47 = vpop.f32.mrf.mxu1 }
 0xe08   :  { %v1312_v55 = vmul.f32 -1.442695, %v954_v34  ;;  %v956_v40 = vadd.f32 %v955_v47, %v914_v37 }
 0xe09   :  { %v957_v63 = vpop.f32.mrf.mxu1 }
 0xe0a   :  { %1467 = vpow2.f32 %v1312_v55  ;;  %v1313_v31 = vmul.f32 -1.442695, %v956_v40 }
 0xe0b   :  { %v958_v59 = vpop.f32.mrf.mxu1  ;;  %1469 = vtanh.f32 %v956_v40 }
 0xe17   :  { %v1468_v45 = vpop.eup %1467 }
 0xe18   :  { %v963_v29 = vadd.f32 1.0, %v1468_v45  ;;  %v1470_v50 = vpop.eup %1469 }
 0xe1a   :  { %1471 = vrcp.f32 %v963_v29 }
 0xe1b   :  { %1473 = vpow2.f32 %v1313_v31 }
 0xe27   :  { %v1472_v21 = vpop.eup %1471 }
 0xe28   :  { %v978_v43 = vmul.f32 %v1472_v21, %v1470_v50  ;;  %v1474_v37 = vpop.eup %1473  ;;  %v977_v7 = vmul.f32 %v1472_v21, %v975_v6  ;;  %v1159_v6 = vld [vmem:[%s2137_s6 + $0x18] sm:$0xff] }
 0xe29   :  { %v970_v49 = vadd.f32 1.0, %v1474_v37 }
 0xe2a   :  { %980 = vrot.lane.b32.xlu0 %v978_v43, %s1528_s3 }
 0xe2b   :  { %1475 = vrcp.f32 %v970_v49  ;;  %v1158_v49 = vld [vmem:[%s2137_s6 + $0x10] sm:$0xff] }
 0xe38   :  { %v1476_v12 = vpop.eup %1475 }
 0xe49   :  { %1024 = vadd.xlane.f32.xlu0 %v1023_v54 }
 0xe4d   :  { %1032 = vadd.xlane.f32.xlu0 %v1031_v30 }
 0xe9c   :  { %v981_v8 = vpop.permute.xlu0 %980 }
 0xe9d   :  { %v983_v11 = vadd.f32 %v981_v8, %v977_v7  ;;  %v1156_v7 = vld [vmem:[%s2137_s6] sm:$0xff] }
 0xe9f   :  { %1477 = vtanh.f32 %v983_v11 }
 0xeac   :  { %v1478_v46 = vpop.eup %1477 }
 0xead   :  { %v985_v52 = vmul.f32 %v1478_v46, %v1476_v12 }
 0xeaf   :  { %988 = vrot.lane.b32.xlu1 %v985_v52, %s1528_s3  ;;  %v1106_v52 = vld [vmem:[#allocation3 + $0x8] sm:$0xff] }
 0xed2   :  { %v1025_v51 = vpop.xlane.xlu0 %1024 }
 0xed3   :  { %1016 = vadd.xlane.f32.xlu1 %v1015_v57 }
 0xed6   :  { %v1033_v58 = vpop.xlane.xlu0 %1032 }
 0xed7   :  { %1040 = vadd.xlane.f32.xlu1 %v1039_v15  ;;  %v1113_v15 = vld [vmem:[#allocation3 + $0x10] sm:$0xff] }
 0xedb   :  { %1056 = vadd.xlane.f32.xlu1 %v1055_v9 }
 0xf21   :  { %v989_v16 = vpop.permute.xlu1 %988 }
 0xf22   :  { %v991_v61 = vsel %vm986_vm12, %v989_v16, %v2024_v44 }
 0xf23   :  { %993 = vst.msk [vmem:[#allocation3 + $0x38] sm:$0xff] %vm260_vm5, %v991_v61  ;;  %994 = vst.msk [vmem:[#allocation4] sm:$0xff] %vm260_vm5, %v991_v61  ;;  %v1127_v61 = vld [vmem:[#allocation3 + $0x20] sm:$0xff] }
 0xf2a   :  { %v997_v10 = vld [vmem:[#allocation4] sm:$0xff]  ;;  %v1058_v39 = vld [vmem:[#allocation3 + $0x38] sm:$0xff] }
 0xf2b   :  { %v998_v18 = vsel %vm38_vm3, %v996_v53, %v997_v10  ;;  %v1060_v25 = vsel %vm38_vm3, %v1058_v39, %v1059_v36  ;;  %vm1078_vm3 = vcmask 56320   ;;  %v1134_v39 = vld [vmem:[#allocation3 + $0x28] sm:$0xff] }
 0xf2c   :  { %v1006_v2 = vmul.f32 %v1314_v22, %v998_v18  ;;  %999 = vst.msk [vmem:[#allocation3] sm:$0xff] %vm260_vm5, %v998_v18  ;;  %1061 = vst.msk [vmem:[#allocation3 + $0x38] sm:$0xff] %vm260_vm5, %v1060_v25  ;;  %v1062_v42 = vmul.f32 %v1314_v22, %v1060_v25 }
 0xf2e   :  { %v1007_v38 = vsel %vm260_vm5, %v1006_v2, 0.0  ;;  %v1063_v44 = vsel %vm260_vm5, %v1062_v42, 0.0  ;;  %v1141_v2 = vld [vmem:[#allocation3 + $0x30] sm:$0xff] }
 0xf2f   :  { %1008 = vadd.xlane.f32.xlu0 %v1007_v38 }
 0xf33   :  { %1048 = vadd.xlane.f32.xlu0 %v1047_v4  ;;  %v1098_v3 = vld [vmem:[#allocation3] sm:$0xff]  ;;  %v1148_v42 = vld [vmem:[#allocation3 + $0x38] sm:$0xff] }
 0xf37   :  { %1064 = vadd.xlane.f32.xlu0 %v1063_v44 }
 0xf5c   :  { %v1017_v0 = vpop.xlane.xlu1 %1016 }
 0xf60   :  { %v1041_v1 = vpop.xlane.xlu1 %1040 }
 0xf64   :  { %v1057_v55 = vpop.xlane.xlu1 %1056 }
 0xfb8   :  { %v1009_v41 = vpop.xlane.xlu0 %1008 }
 0xfb9   :  { %v1067_v13 = vsel %vm1066_vm13, %v1009_v41, %v1017_v0 }
 0xfba   :  { %v1069_v19 = vsel %vm1068_vm14, %v1067_v13, %v1025_v51 }
 0xfbb   :  { %v1071_v24 = vsel %vm1070_vm15, %v1069_v19, %v1033_v58 }
 0xfbc   :  { %v1049_v62 = vpop.xlane.xlu0 %1048  ;;  %v1073_v34 = vsel %vm1072_vm0, %v1071_v24, %v1041_v1 }
 0xfbd   :  { %v1075_v47 = vsel %vm1074_vm1, %v1073_v34, %v1049_v62 }
 0xfbe   :  { %v1077_v59 = vsel %vm1076_vm2, %v1075_v47, %v1057_v55 }
 0xfc0   :  { %v1065_v63 = vpop.xlane.xlu0 %1064 }
 0xfc1   :  { %v1079_v40 = vsel %vm1078_vm3, %v1077_v59, %v1065_v63 }
 0xfc2   :  { %v1081_v45 = vsel %vm1080_vm6, %v1079_v40, -1e+30 }
 0xfc3   :  { %v1083_v29 = vsel %vm1082_vm4, %v1081_v45, -inf }
 0xfc4   :  { %1084 = vmax.xlane.f32.xlu1 %v1083_v29 }
0x104d   :  { %v1085_v50 = vpop.xlane.xlu1 %1084 }
0x104e   :  { %v1086_v21 = vsub.f32 %v1079_v40, %v1085_v50 }
0x1050   :  { %v1087_v43 = vmul.f32 1.442695, %v1086_v21 }
0x1052   :  { %1479 = vpow2.f32 %v1087_v43 }
0x105f   :  { %v1480_v22 = vpop.eup %1479 }
0x1060   :  { %v1089_v23 = vsel %vm1080_vm6, %v1480_v22, 0.0 }
0x1061   :  { %v1090_v54 = vsel %vm1082_vm4, %v1089_v23, 0.0 }
0x1062   :  { %1091 = vadd.xlane.f32.xlu0 %v1090_v54 }
0x10eb   :  { %v1092_v28 = vpop.xlane.xlu0 %1091 }
0x10ec   :  { %vm1093_vm7 = vcmp.gt.f32.partialorder %v1092_v28, 0.0 }
0x10ed   :  { %v1094_v30 = vsel %vm1093_vm7, %v1092_v28, 1.0 }
0x10ee   :  { %1481 = vrcp.f32 %v1094_v30 }
0x10fb   :  { %v1482_v31 = vpop.eup %1481 }
0x10fc   :  { %v1096_v37 = vmul.f32 %v1482_v31, %v1089_v23 }
0x10fe   :  { %1097 = vst.msk [vmem:[#allocation7] sm:$0xff] %vm1082_vm4, %v1096_v37  ;;  %1108 = vperm.xlu0 %1360, %v1096_v37   ;;  %1101 = vperm.xlu1 %1359, %v1096_v37  }
0x1102   :  { %1361 = vset.pattern.permute.xlu1 %v1535_v17  ;;  %1367 = vset.pattern.permute.xlu0 %v1530_v27  ;;  %v1162_v17 = vld [vmem:[%s2137_s6 + $0x30] sm:$0xff] }
0x1103   :  { %1115 = vperm.xlu1 %1361, %v1096_v37   ;;  %1329 = vmatpush3.msra.mxu0 %v1162_v17 }
0x1104   :  { %1330 = vmatprep.subr.mxu0 %v1536_v26 }
0x1107   :  { %1362 = vset.pattern.permute.xlu1 %v1534_v32  ;;  %v1161_v32 = vld [vmem:[%s2137_s6 + $0x28] sm:$0xff] }
0x1108   :  { %1122 = vperm.xlu1 %1362, %v1096_v37   ;;  %1331 = vmatpush3.msra.mxu0 %v1161_v32 }
0x1109   :  { %1332 = vmatprep.subr.mxu0 %v1536_v26 }
0x110c   :  { %1363 = vset.pattern.permute.xlu1 %v1533_v56  ;;  %v1160_v56 = vld [vmem:[%s2137_s6 + $0x20] sm:$0xff] }
0x110d   :  { %1129 = vperm.xlu1 %1363, %v1096_v37   ;;  %1333 = vmatpush3.msra.mxu0 %v1160_v56 }
0x110e   :  { %1334 = vmatprep.subr.mxu0 %v1536_v26 }
0x110f   :  { %1335 = vmatpush3.msra.mxu0 %v1159_v6 }
0x1110   :  { %1336 = vmatprep.subr.mxu0 %v1536_v26 }
0x1111   :  { %1364 = vset.pattern.permute.xlu1 %v1532_v5  ;;  %1337 = vmatpush3.msra.mxu0 %v1158_v49  ;;  %v1157_v5 = vld [vmem:[%s2137_s6 + $0x8] sm:$0xff]  ;;  %s1538_s6 = smov [#allocation5]  }
0x1112   :  { %1136 = vperm.xlu1 %1364, %v1096_v37   ;;  %1338 = vmatprep.subr.mxu0 %v1536_v26  ;;  %s1253_s23 = sshll.u32 %s1538_s6, 4  ;;  %s1254_s23 = int_to_ptr.vmem [resolvable:$true] %s1253_s23 }
0x1113   :  { %1339 = vmatpush3.msra.mxu0 %v1157_v5  ;;  %s1483_s1 = scalar_lea.vmem %s1254_s23, 128  ;;  %p1488_p1 = scmp.lt.s32.totalorder %s1254_s23, %s1254_s23 }
0x1114   :  { %1340 = vmatprep.subr.mxu0 %v1536_v26  ;;  %p1484_p0 = scmp.ne.s32.totalorder %s1254_s23, %s1483_s1  ;;  %p1489_p2 = scmp.lt.s32.totalorder %s1483_s1, %s1483_s1 }
0x1115   :  { %1341 = vmatpush3.msra.mxu0 %v1156_v7 }
0x1116   :  { %1365 = vset.pattern.permute.xlu1 %v1531_v48  ;;  %p1490_p3 = por %p1489_p2, %p1488_p1 }
0x1117   :  { %1143 = vperm.xlu1 %1365, %v1096_v37  }
0x1118   :  { %p1491_p4 = pnand %p1490_p3, %p1484_p0 }
0x111b   :  { %1366 = vset.pattern.permute.xlu1 %v1530_v27 }
0x111c   :  { %1150 = vperm.xlu1 %1366, %v1096_v37  }
0x1179   :  { %v1102_v48 = vpop.permute.xlu1 %1101  ;;  %v1109_v12 = vpop.permute.xlu0 %1108 }
0x117a   :  { %v1111_v57 = vmul.f32 %v1109_v12, %v1106_v52  ;;  %v1104_v14 = vmul.f32 %v1102_v48, %v1098_v3 }
0x117c   :  { %v1112_v20 = vadd.f32 %v1111_v57, %v1104_v14 }
0x117e   :  { %v1116_v8 = vpop.permute.xlu1 %1115 }
0x117f   :  { %v1118_v27 = vmul.f32 %v1116_v8, %v1113_v15 }
0x1181   :  { %v1119_v53 = vadd.f32 %v1118_v27, %v1112_v20 }
0x1183   :  { %v1123_v11 = vpop.permute.xlu1 %1122 }
0x1184   :  { %v1125_v16 = vmul.f32 %v1123_v11, %v1120_v33 }
0x1186   :  { %v1126_v36 = vadd.f32 %v1125_v16, %v1119_v53 }
0x1188   :  { %v1130_v46 = vpop.permute.xlu1 %1129 }
0x1189   :  { %v1132_v10 = vmul.f32 %v1130_v46, %v1127_v61 }
0x118b   :  { %v1133_v38 = vadd.f32 %v1132_v10, %v1126_v36 }
0x118d   :  { %v1137_v9 = vpop.permute.xlu1 %1136 }
0x118e   :  { %v1139_v18 = vmul.f32 %v1137_v9, %v1134_v39 }
0x1190   :  { %v1140_v4 = vadd.f32 %v1139_v18, %v1133_v38 }
0x1192   :  { %v1144_v25 = vpop.permute.xlu1 %1143 }
0x1193   :  { %v1146_v60 = vmul.f32 %v1144_v25, %v1141_v2 }
0x1195   :  { %v1147_v51 = vadd.f32 %v1146_v60, %v1140_v4 }
0x1197   :  { %v1151_v44 = vpop.permute.xlu1 %1150 }
0x1198   :  { %v1153_v0 = vmul.f32 %v1151_v44, %v1148_v42 }
0x119a   :  { %v1154_v58 = vadd.f32 %v1153_v0, %v1147_v51 }
0x119c   :  { %1155 = vst.msk [vmem:[#allocation5] sm:$0xff] %vm260_vm5, %v1154_v58  ;;  %1343 = vmatmul.mubr.msk.f32.vlgmr.msra.gmra.mxu0 %vm260_vm5, %v1154_v58 }
0x119d   :  { %1494 = shalt.err (!%p1491_p4)
}
0x119e   :  { %1256 = dma.vmem_to_hbm [thread:$0]  %s1254_s23, 128, %s2140_s9, [#allocation6]  }
0x119f   :  { %s1503_s27 = scalar_lea.vmem %s1264_s25, 128  ;;  %p1508_p6 = scmp.lt.s32.totalorder %s1264_s25, %s1264_s25 }
0x11a0   :  { %p1504_p5 = scmp.ne.s32.totalorder %s1264_s25, %s1503_s27  ;;  %p1509_p7 = scmp.lt.s32.totalorder %s1503_s27, %s1503_s27 }
0x11a2   :  { %p1510_p8 = por %p1509_p7, %p1508_p6 }
0x11a4   :  { %p1511_p9 = pnand %p1510_p8, %p1504_p5 }
0x11a6   :  { %1514 = shalt.err (!%p1511_p9)
}
0x11a7   :  { %1266 = dma.vmem_to_hbm [thread:$0]  %s1264_s25, 128, %s2141_s10, [#allocation8]   ;;  %v1315_v41 = vld [vmem:[%s2138_s7] ss:$0 sm:$0xff] }
0x125c   :  { %v1240_v1 = vpop.f32.mrf.mxu0 }
0x125d   :  { %v1241_v13 = vadd.f32 %v1315_v41, %v1240_v1 }
0x125e   :  { %v1344_v19 = vpop.f32.mrf.mxu0 }
0x125f   :  { %1244 = vst.msk [vmem:[%s2139_s8] sm:$0xff] %vm1072_vm0, %v1241_v13 }
0x1260   :  { %1523 = dma.done.wait [#allocation6], 128  }
0x1261   :  { %1524 = vsyncadd [#allocation6], 4294967168 }
0x1262   :  { %1525 = dma.done.wait [#allocation8], 128  }
0x1263   :  { %1526 = vsyncadd [#allocation8], 4294967168 }
0x1264   :  { %1275 = vsyncpa [#allocation6], 1 }
0x1265   :  { %1276 = vsyncpa [#allocation8], 1 }

</bundles_post_ra>
